<compile_context>
chip_gen: v7x
topology: tpu7x:2x2x1
jax: 0.10.0
libtpu: 0.0.40
codegen_flags: <defaults>
</compile_context>

<pallas_src>
import jax
import jax.numpy as jnp
from jax.experimental import pallas as pl
from jax.experimental.pallas import tpu as pltpu


FMA_MAX_K = 16        # contraction depth <= this stays on the VPU (per-k FMAs)
MXU_BF16_MIN_K = 128  # bf16 MXU only when K can fill a decent fraction of the
                      # systolic depth; conv2 (K = H//16) therefore stays f32
                      # at every production H, matching PyTorch semantics.


# ----------------------------------------------------------------------------
# Kernel
# ----------------------------------------------------------------------------

def _channels_major_layer(x, w_ref, b_ref, relu):
    """y[b, co, n] = sum_k w[co, k] * x[b, k, n] + bias[co]  (Conv1d k=1 + folded BN).

    x: (Bt, K, Nt) f32 -- channels on sublanes, points lane-dense.
    * w_ref 3-D (K, C_out, 1): VPU path. K broadcast-FMAs; w_ref[k] is a
      (C_out, 1) column (no lane slicing), x[:, k:k+1, :] a lane-dense row.
    * w_ref 2-D (C_out, K): MXU path, transposed contraction so the point axis
      stays on lanes; f32, or bf16 (f32 accumulation) for deep K.
    """
    if len(w_ref.shape) == 3:                              # VPU FMA path
        K = w_ref.shape[0]
        acc = w_ref[0][None] * x[:, 0:1, :]                # (Bt, C_out, Nt)
        for k in range(1, K):
            acc = acc + w_ref[k][None] * x[:, k:k + 1, :]
        acc = acc + b_ref[...][None]
    else:                                                  # MXU path
        w = w_ref[...]                                     # (C_out, K)
        acc = jnp.einsum("ok,bkn->bon", w, x.astype(w.dtype),
                         preferred_element_type=jnp.float32) + b_ref[...][None]
    return jnp.maximum(acc, 0.0) if relu else acc


def point_encoder_kernel(x_ref, w1_ref, b1_ref, w2_ref, b2_ref,
                         w3_ref, b3_ref, w4_ref, b4_ref,
                         out_ref, maxacc_ref):
    k = pl.program_id(1)

    @pl.when(k == 0)
    def _init():
        maxacc_ref[...] = jnp.full(maxacc_ref.shape, -jnp.inf, maxacc_ref.dtype)

    x = x_ref[...]                                     # (Bt, 3, Nt) channels-major

    h = _channels_major_layer(x, w1_ref, b1_ref, relu=True)    # conv1 + BN + ReLU
    h = _channels_major_layer(h, w2_ref, b2_ref, relu=True)    # conv2 + BN + ReLU
    h = _channels_major_layer(h, w3_ref, b3_ref, relu=False)   # conv3 + BN

    # Partial global max over this point tile (lane reduction), folded into
    # the running per-batch max.
    maxacc_ref[...] = jnp.maximum(maxacc_ref[...], jnp.max(h, axis=-1))

    # Final Linear(+folded BN)+ReLU once every point tile of this batch tile
    # is reduced. There is at most one batch tile per TensorCore, so this runs
    # once per core (in parallel) -- no serial tiny-M matmul repeat.
    @pl.when(k == pl.num_programs(1) - 1)
    def _finish():
        feat = maxacc_ref[...]                         # (Bt, H), H on lanes
        w4 = w4_ref[...]
        y = jnp.dot(feat.astype(w4.dtype), w4,
                    preferred_element_type=jnp.float32) + b4_ref[...]
        out_ref[...] = jnp.maximum(y, 0.0)


# ----------------------------------------------------------------------------
# Tiling heuristics (TensorCore-count and VMEM-budget aware)
# ----------------------------------------------------------------------------

def _tpu_info():
    try:
        return pltpu.get_tpu_info()
    except Exception:
        return None


def _vmem_capacity_bytes():
    info = _tpu_info()
    for attr in ("vmem_capacity_bytes", "vmem_bytes", "vmem_size_bytes"):
        v = getattr(info, attr, None) if info is not None else None
        try:
            v = int(v)
        except (TypeError, ValueError):
            continue
        if v > 0:
            return v
    return 64 * 1024 * 1024            # conservative fallback: v7x per-TC physical


def _num_tensorcores():
    info = _tpu_info()
    for attr in ("num_tensorcores", "tensorcore_count", "num_cores",
                 "cores_per_chip"):
        v = getattr(info, attr, None) if info is not None else None
        try:
            v = int(v)
        except (TypeError, ValueError):
            continue
        if v > 0:
            return v
    return 1                           # v5e/v6e: single TC -> never split the batch


def _pick_batch_tile(B, n_cores):
    # Split into exactly 2 batch tiles only when there are >= 2 TensorCores
    # (v7x); each tile must keep the (Bt, bottleneck) output block legal
    # (Bt == B or Bt % 8 == 0). On 1-TC chips extra tiles are pure overhead.
    if n_cores >= 2 and B % 2 == 0:
        bt = B // 2
        if bt % 8 == 0:
            return bt
    return B


def _round_up(v, m):
    return -(-v // m) * m


def _estimate_tile_vmem(Bt, Nt, c1, c2, H, Bk, weight_bufs):
    """Rough per-grid-step VMEM footprint (bytes) for the chosen tiles."""
    lane = _round_up(Nt, 128)
    stream_in = 2 * Bt * 8 * lane * 4                       # (Bt,3,Nt), double-buffered
    acts = 4 * Bt * lane * (_round_up(c1, 8) + _round_up(c2, 8) + _round_up(H, 8))
    acts += 2 * Bt * lane * _round_up(H, 8)                 # slack for a bf16 copy
    weights = 4 * weight_bufs * (3 * c1 + c1 * c2 + c2 * H + H * Bk
                                 + c1 + c2 + H + Bk)
    fixed = weights + 4 * _round_up(Bt, 8) * _round_up(H, 128)        # maxacc
    fixed += 2 * 4 * _round_up(Bt, 8) * _round_up(Bk, 128)            # out blocks
    return stream_in + acts + fixed


def _legal_point_tiles(N):
    # Legal last-dim block sizes: multiples of 128 that divide N, or N itself.
    tiles = {N}
    for nt in range(128, N, 128):
        if N % nt == 0:
            tiles.add(nt)
    return sorted(tiles, reverse=True)


def _pick_point_tile(N, Bt, c1, c2, H, Bk, budget):
    for nt in _legal_point_tiles(N):                 # biggest tile that fits
        if _estimate_tile_vmem(Bt, nt, c1, c2, H, Bk, weight_bufs=2) <= budget:
            return nt
    return _legal_point_tiles(N)[-1]                 # smallest legal tile


# ----------------------------------------------------------------------------
# pallas_call wrapper
# ----------------------------------------------------------------------------

def _pallas_forward(x_b3n, params, Bt, Nt, vmem_limit, single_buffer_weights):
    w1, b1, w2, b2, w3, b3, w4, b4 = params
    B, _, N = x_b3n.shape
    H, Bk = w4.shape

    def weight_spec(arr):
        nd = arr.ndim
        imap = lambda b, k, _nd=nd: (0,) * _nd
        if single_buffer_weights:
            # Grid-invariant blocks are DMA'd once; a single VMEM buffer is
            # enough and halves their resident footprint.
            return pl.BlockSpec(arr.shape, imap, pipeline_mode=pl.Buffered(1))
        return pl.BlockSpec(arr.shape, imap)

    return pl.pallas_call(
        point_encoder_kernel,
        out_shape=jax.ShapeDtypeStruct((B, Bk), jnp.float32),
        grid_spec=pltpu.PrefetchScalarGridSpec(
            num_scalar_prefetch=0,
            grid=(B // Bt, N // Nt),                  # reduction (points) axis last
            in_specs=[
                pl.BlockSpec((Bt, 3, Nt), lambda b, k: (b, 0, k)),
                weight_spec(w1), weight_spec(b1),
                weight_spec(w2), weight_spec(b2),
                weight_spec(w3), weight_spec(b3),
                weight_spec(w4), weight_spec(b4),
            ],
            out_specs=pl.BlockSpec((Bt, Bk), lambda b, k: (b, 0)),
            scratch_shapes=[pltpu.VMEM((Bt, H), jnp.float32)],
        ),
        compiler_params=pltpu.CompilerParams(
            dimension_semantics=("parallel", "arbitrary"),
            vmem_limit_bytes=int(vmem_limit)),
    )(x_b3n, w1, b1, w2, b2, w3, b3, w4, b4)


def point_encoder(x_b3n, params):
    """x_b3n: (B, 3, N) float32 channels-major points (native PyTorch layout).
    params: BN-folded weights/biases from make_params()."""
    B, C, N = x_b3n.shape
    assert C == 3, "PointEncoder expects 3-channel point clouds"
    w1, b1, w2, b2, w3, b3, w4, b4 = params
    H, Bk = w4.shape
    c1, c2 = b1.shape[0], b2.shape[0]

    n_cores = _num_tensorcores()
    cap = _vmem_capacity_bytes()
    budget = int(0.45 * cap)                          # per-generation VMEM budget

    Bt = _pick_batch_tile(B, n_cores)
    Nt = _pick_point_tile(N, Bt, c1, c2, H, Bk, budget)
    est = _estimate_tile_vmem(Bt, Nt, c1, c2, H, Bk, weight_bufs=2)
    vmem_limit = min(int(0.9 * cap), max(32 * 1024 * 1024, int(1.5 * est)))

    if hasattr(pl, "Buffered"):
        try:
            return _pallas_forward(x_b3n, params, Bt, Nt, vmem_limit, True)
        except Exception:
            pass   # pl.Buffered(1) unsupported here -> default double buffering
    return _pallas_forward(x_b3n, params, Bt, Nt, vmem_limit, False)


# ----------------------------------------------------------------------------
# Parameter construction (BN folding + layout/dtype routing)
# ----------------------------------------------------------------------------

def fold_bn_conv(W, b, gamma, beta, mean, var, eps=1e-5):
    """Conv1d(k=1)/Linear weight (C_out, C_in) + bias, followed by a
    BatchNorm1d in eval mode -> effective (C_out, C_in) weight and (C_out,) bias."""
    s = gamma / jnp.sqrt(var + eps)
    return W * s[:, None], (b - mean) * s + beta


def _route(K):
    if K <= FMA_MAX_K:
        return "fma"
    return "bf16" if K >= MXU_BF16_MIN_K else "f32"


def _pack_conv(W_eff, b_eff):
    c_out, K = W_eff.shape
    b = b_eff.reshape(c_out, 1).astype(jnp.float32)
    r = _route(K)
    if r == "fma":
        # (K, C_out, 1): w[k] is a ready-to-broadcast column for the VPU path.
        return jnp.transpose(W_eff)[:, :, None].astype(jnp.float32), b
    dt = jnp.bfloat16 if r == "bf16" else jnp.float32
    return W_eff.astype(dt), b                              # (C_out, K) for the MXU


def _pack_linear(W_eff, b_eff):
    out_dim, in_dim = W_eff.shape
    dt = jnp.bfloat16 if in_dim >= MXU_BF16_MIN_K else jnp.float32
    return (jnp.transpose(W_eff).astype(dt),                # (H, bottleneck)
            b_eff.reshape(1, out_dim).astype(jnp.float32))


def make_params(key, hide_size=64, bottleneck_size=128):
    c1, c2, H, Bk = hide_size // 16, hide_size // 8, hide_size, bottleneck_size
    ks = jax.random.split(key, 8)

    def layer(k, cout, cin, scale=0.1):
        kw, kb = jax.random.split(k)
        return (scale * jax.random.normal(kw, (cout, cin), jnp.float32),
                scale * jax.random.normal(kb, (cout,), jnp.float32))

    def bn(k, c):
        kg, kb = jax.random.split(k)
        gamma = 1.0 + 0.1 * jax.random.normal(kg, (c,), jnp.float32)
        beta = 0.1 * jax.random.normal(kb, (c,), jnp.float32)
        return gamma, beta, jnp.zeros((c,), jnp.float32), jnp.ones((c,), jnp.float32)

    W1, bb1 = layer(ks[0], c1, 3)
    W2, bb2 = layer(ks[1], c2, c1)
    W3, bb3 = layer(ks[2], H, c2)
    W4, bb4 = layer(ks[3], Bk, H)

    w1, b1 = _pack_conv(*fold_bn_conv(W1, bb1, *bn(ks[4], c1)))
    w2, b2 = _pack_conv(*fold_bn_conv(W2, bb2, *bn(ks[5], c2)))
    w3, b3 = _pack_conv(*fold_bn_conv(W3, bb3, *bn(ks[6], H)))
    w4, b4 = _pack_linear(*fold_bn_conv(W4, bb4, *bn(ks[7], Bk)))
    return (w1, b1, w2, b2, w3, b3, w4, b4)


# ----------------------------------------------------------------------------
# Pure-JAX reference (mirrors the kernel's dtype routing)
# ----------------------------------------------------------------------------

def ref_forward(x_b3n, params):
    w1, b1, w2, b2, w3, b3, w4, b4 = params
    hi = jax.lax.Precision.HIGHEST

    def as2d(w):                                  # -> (C_out, K)
        return jnp.squeeze(w, -1).T if w.ndim == 3 else w

    def conv(x, w, b, relu):
        w2d = as2d(w)
        prec = hi if w2d.dtype == jnp.float32 else None
        h = jnp.einsum("ok,bkn->bon", w2d, x.astype(w2d.dtype),
                       preferred_element_type=jnp.float32, precision=prec)
        h = h + b[None]
        return jnp.maximum(h, 0.0) if relu else h

    h = conv(x_b3n, w1, b1, True)
    h = conv(h, w2, b2, True)
    h = conv(h, w3, b3, False)
    feat = jnp.max(h, axis=-1)                    # (B, H)
    prec = hi if w4.dtype == jnp.float32 else None
    y = jnp.dot(feat.astype(w4.dtype), w4,
                preferred_element_type=jnp.float32, precision=prec) + b4
    return jnp.maximum(y, 0.0)                    # (B, bottleneck)


if __name__ == "__main__":
    key = jax.random.PRNGKey(0)
    k_x, k_p = jax.random.split(key)

    B, N = 2, 64                   # batch, number of points
    hide_size, bottleneck = 64, 128

    # Native PyTorch layout: (B, 3, N), channels-major. No wrapper transpose.
    x_b3n = jax.random.normal(k_x, (B, 3, N), jnp.float32)
    params = make_params(k_p, hide_size=hide_size, bottleneck_size=bottleneck)

    out = jax.block_until_ready(point_encoder(x_b3n, params))

    ref = ref_forward(x_b3n, params)
    assert out.shape == (B, bottleneck)
    assert jnp.allclose(out, ref, atol=5e-3, rtol=5e-3), "mismatch vs reference"

    print("KERNEL_OK")
</pallas_src>

<mosaic_0001>
module attributes {stable_mosaic.version = 11 : i64} {
  func.func @point_encoder_kernel(%arg0: i32, %arg1: i32, %arg2: memref<2x3x64xf32, #tpu.memory_space<vmem>>, %arg3: memref<3x4x1xf32, #tpu.memory_space<vmem>>, %arg4: memref<4x1xf32, #tpu.memory_space<vmem>>, %arg5: memref<4x8x1xf32, #tpu.memory_space<vmem>>, %arg6: memref<8x1xf32, #tpu.memory_space<vmem>>, %arg7: memref<8x64x1xf32, #tpu.memory_space<vmem>>, %arg8: memref<64x1xf32, #tpu.memory_space<vmem>>, %arg9: memref<64x128xf32, #tpu.memory_space<vmem>>, %arg10: memref<1x128xf32, #tpu.memory_space<vmem>>, %arg11: memref<2x128xf32, #tpu.memory_space<vmem>>, %arg12: memref<2x64xf32, #tpu.memory_space<vmem>>) attributes {dimension_semantics = [#tpu.dimension_semantics<parallel>, #tpu.dimension_semantics<arbitrary>], iteration_bounds = array<i64: 1, 1>, scalar_prefetch = 0 : i64, scratch_operands = 1 : i64, tpu.core_type = #tpu.core_type<tc>, window_params = [{transform_indices = @transform_0, window_bounds = array<i64: 2, 3, 64>}, {pipeline_mode = #tpu.pipeline_mode<synchronous>, transform_indices = @transform_1, window_bounds = array<i64: 3, 4, 1>}, {pipeline_mode = #tpu.pipeline_mode<synchronous>, transform_indices = @transform_2, window_bounds = array<i64: 4, 1>}, {pipeline_mode = #tpu.pipeline_mode<synchronous>, transform_indices = @transform_3, window_bounds = array<i64: 4, 8, 1>}, {pipeline_mode = #tpu.pipeline_mode<synchronous>, transform_indices = @transform_4, window_bounds = array<i64: 8, 1>}, {pipeline_mode = #tpu.pipeline_mode<synchronous>, transform_indices = @transform_5, window_bounds = array<i64: 8, 64, 1>}, {pipeline_mode = #tpu.pipeline_mode<synchronous>, transform_indices = @transform_6, window_bounds = array<i64: 64, 1>}, {pipeline_mode = #tpu.pipeline_mode<synchronous>, transform_indices = @transform_7, window_bounds = array<i64: 64, 128>}, {pipeline_mode = #tpu.pipeline_mode<synchronous>, transform_indices = @transform_8, window_bounds = array<i64: 1, 128>}, {transform_indices = @transform_9, window_bounds = array<i64: 2, 128>}]} {
    %c0_i32 = arith.constant 0 : i32
    %0 = arith.cmpi eq, %arg1, %c0_i32 : i32
    %1 = arith.extui %0 : i1 to i32
    %c0_i32_0 = arith.constant 0 : i32
    %2 = arith.cmpi ne, %1, %c0_i32_0 : i32
    scf.if %2 {
      %cst_55 = arith.constant 0xFF800000 : f32
      %144 = vector.broadcast %cst_55 : f32 to vector<2x64xf32>
      %c0_56 = arith.constant 0 : index
      %c0_57 = arith.constant 0 : index
      %145 = vector.load %arg12[%c0_56, %c0_57] : memref<2x64xf32, #tpu.memory_space<vmem>>, vector<2x64xf32>
      tpu.vector_store %arg12[%c0_56, %c0_57], %144 {strides = array<i32>} : memref<2x64xf32, #tpu.memory_space<vmem>>, vector<2x64xf32>,
    } else {
    }
    %c0 = arith.constant 0 : index
    %c0_1 = arith.constant 0 : index
    %c0_2 = arith.constant 0 : index
    %3 = vector.load %arg2[%c0, %c0_1, %c0_2] : memref<2x3x64xf32, #tpu.memory_space<vmem>>, vector<2x3x64xf32>
    %c0_3 = arith.constant 0 : index
    %c0_4 = arith.constant 0 : index
    %c0_5 = arith.constant 0 : index
    %4 = vector.load %arg3[%c0_3, %c0_4, %c0_5] : memref<3x4x1xf32, #tpu.memory_space<vmem>>, vector<1x4x1xf32>
    %5 = vector.shape_cast %4 : vector<1x4x1xf32> to vector<4x1xf32>
    %6 = vector.shape_cast %5 : vector<4x1xf32> to vector<1x4x1xf32>
    %7 = vector.extract_strided_slice %3 {offsets = [0, 0, 0], sizes = [2, 1, 64], strides = [1, 1, 1]} : vector<2x3x64xf32> to vector<2x1x64xf32>
    %8 = vector.broadcast %6 : vector<1x4x1xf32> to vector<2x4x64xf32>
    %9 = vector.broadcast %7 : vector<2x1x64xf32> to vector<2x4x64xf32>
    %10 = arith.mulf %8, %9 : vector<2x4x64xf32>
    %c1 = arith.constant 1 : index
    %c0_6 = arith.constant 0 : index
    %c0_7 = arith.constant 0 : index
    %11 = vector.load %arg3[%c1, %c0_6, %c0_7] : memref<3x4x1xf32, #tpu.memory_space<vmem>>, vector<1x4x1xf32>
    %12 = vector.shape_cast %11 : vector<1x4x1xf32> to vector<4x1xf32>
    %13 = vector.shape_cast %12 : vector<4x1xf32> to vector<1x4x1xf32>
    %14 = vector.extract_strided_slice %3 {offsets = [0, 1, 0], sizes = [2, 1, 64], strides = [1, 1, 1]} : vector<2x3x64xf32> to vector<2x1x64xf32>
    %15 = vector.broadcast %13 : vector<1x4x1xf32> to vector<2x4x64xf32>
    %16 = vector.broadcast %14 : vector<2x1x64xf32> to vector<2x4x64xf32>
    %17 = arith.mulf %15, %16 : vector<2x4x64xf32>
    %18 = arith.addf %10, %17 : vector<2x4x64xf32>
    %c2 = arith.constant 2 : index
    %c0_8 = arith.constant 0 : index
    %c0_9 = arith.constant 0 : index
    %19 = vector.load %arg3[%c2, %c0_8, %c0_9] : memref<3x4x1xf32, #tpu.memory_space<vmem>>, vector<1x4x1xf32>
    %20 = vector.shape_cast %19 : vector<1x4x1xf32> to vector<4x1xf32>
    %21 = vector.shape_cast %20 : vector<4x1xf32> to vector<1x4x1xf32>
    %22 = vector.extract_strided_slice %3 {offsets = [0, 2, 0], sizes = [2, 1, 64], strides = [1, 1, 1]} : vector<2x3x64xf32> to vector<2x1x64xf32>
    %23 = vector.broadcast %21 : vector<1x4x1xf32> to vector<2x4x64xf32>
    %24 = vector.broadcast %22 : vector<2x1x64xf32> to vector<2x4x64xf32>
    %25 = arith.mulf %23, %24 : vector<2x4x64xf32>
    %26 = arith.addf %18, %25 : vector<2x4x64xf32>
    %c0_10 = arith.constant 0 : index
    %c0_11 = arith.constant 0 : index
    %27 = vector.load %arg4[%c0_10, %c0_11] : memref<4x1xf32, #tpu.memory_space<vmem>>, vector<4x1xf32>
    %28 = vector.shape_cast %27 : vector<4x1xf32> to vector<1x4x1xf32>
    %29 = vector.broadcast %28 : vector<1x4x1xf32> to vector<2x4x64xf32>
    %30 = arith.addf %26, %29 : vector<2x4x64xf32>
    %cst = arith.constant 0.000000e+00 : f32
    %31 = vector.broadcast %cst : f32 to vector<2x4x64xf32>
    %32 = arith.maximumf %30, %31 : vector<2x4x64xf32>
    %c0_12 = arith.constant 0 : index
    %c0_13 = arith.constant 0 : index
    %c0_14 = arith.constant 0 : index
    %33 = vector.load %arg5[%c0_12, %c0_13, %c0_14] : memref<4x8x1xf32, #tpu.memory_space<vmem>>, vector<1x8x1xf32>
    %34 = vector.shape_cast %33 : vector<1x8x1xf32> to vector<8x1xf32>
    %35 = vector.shape_cast %34 : vector<8x1xf32> to vector<1x8x1xf32>
    %36 = vector.extract_strided_slice %32 {offsets = [0, 0, 0], sizes = [2, 1, 64], strides = [1, 1, 1]} : vector<2x4x64xf32> to vector<2x1x64xf32>
    %37 = vector.broadcast %35 : vector<1x8x1xf32> to vector<2x8x64xf32>
    %38 = vector.broadcast %36 : vector<2x1x64xf32> to vector<2x8x64xf32>
    %39 = arith.mulf %37, %38 : vector<2x8x64xf32>
    %c1_15 = arith.constant 1 : index
    %c0_16 = arith.constant 0 : index
    %c0_17 = arith.constant 0 : index
    %40 = vector.load %arg5[%c1_15, %c0_16, %c0_17] : memref<4x8x1xf32, #tpu.memory_space<vmem>>, vector<1x8x1xf32>
    %41 = vector.shape_cast %40 : vector<1x8x1xf32> to vector<8x1xf32>
    %42 = vector.shape_cast %41 : vector<8x1xf32> to vector<1x8x1xf32>
    %43 = vector.extract_strided_slice %32 {offsets = [0, 1, 0], sizes = [2, 1, 64], strides = [1, 1, 1]} : vector<2x4x64xf32> to vector<2x1x64xf32>
    %44 = vector.broadcast %42 : vector<1x8x1xf32> to vector<2x8x64xf32>
    %45 = vector.broadcast %43 : vector<2x1x64xf32> to vector<2x8x64xf32>
    %46 = arith.mulf %44, %45 : vector<2x8x64xf32>
    %47 = arith.addf %39, %46 : vector<2x8x64xf32>
    %c2_18 = arith.constant 2 : index
    %c0_19 = arith.constant 0 : index
    %c0_20 = arith.constant 0 : index
    %48 = vector.load %arg5[%c2_18, %c0_19, %c0_20] : memref<4x8x1xf32, #tpu.memory_space<vmem>>, vector<1x8x1xf32>
    %49 = vector.shape_cast %48 : vector<1x8x1xf32> to vector<8x1xf32>
    %50 = vector.shape_cast %49 : vector<8x1xf32> to vector<1x8x1xf32>
    %51 = vector.extract_strided_slice %32 {offsets = [0, 2, 0], sizes = [2, 1, 64], strides = [1, 1, 1]} : vector<2x4x64xf32> to vector<2x1x64xf32>
    %52 = vector.broadcast %50 : vector<1x8x1xf32> to vector<2x8x64xf32>
    %53 = vector.broadcast %51 : vector<2x1x64xf32> to vector<2x8x64xf32>
    %54 = arith.mulf %52, %53 : vector<2x8x64xf32>
    %55 = arith.addf %47, %54 : vector<2x8x64xf32>
    %c3 = arith.constant 3 : index
    %c0_21 = arith.constant 0 : index
    %c0_22 = arith.constant 0 : index
    %56 = vector.load %arg5[%c3, %c0_21, %c0_22] : memref<4x8x1xf32, #tpu.memory_space<vmem>>, vector<1x8x1xf32>
    %57 = vector.shape_cast %56 : vector<1x8x1xf32> to vector<8x1xf32>
    %58 = vector.shape_cast %57 : vector<8x1xf32> to vector<1x8x1xf32>
    %59 = vector.extract_strided_slice %32 {offsets = [0, 3, 0], sizes = [2, 1, 64], strides = [1, 1, 1]} : vector<2x4x64xf32> to vector<2x1x64xf32>
    %60 = vector.broadcast %58 : vector<1x8x1xf32> to vector<2x8x64xf32>
    %61 = vector.broadcast %59 : vector<2x1x64xf32> to vector<2x8x64xf32>
    %62 = arith.mulf %60, %61 : vector<2x8x64xf32>
    %63 = arith.addf %55, %62 : vector<2x8x64xf32>
    %c0_23 = arith.constant 0 : index
    %c0_24 = arith.constant 0 : index
    %64 = vector.load %arg6[%c0_23, %c0_24] : memref<8x1xf32, #tpu.memory_space<vmem>>, vector<8x1xf32>
    %65 = vector.shape_cast %64 : vector<8x1xf32> to vector<1x8x1xf32>
    %66 = vector.broadcast %65 : vector<1x8x1xf32> to vector<2x8x64xf32>
    %67 = arith.addf %63, %66 : vector<2x8x64xf32>
    %cst_25 = arith.constant 0.000000e+00 : f32
    %68 = vector.broadcast %cst_25 : f32 to vector<2x8x64xf32>
    %69 = arith.maximumf %67, %68 : vector<2x8x64xf32>
    %c0_26 = arith.constant 0 : index
    %c0_27 = arith.constant 0 : index
    %c0_28 = arith.constant 0 : index
    %70 = vector.load %arg7[%c0_26, %c0_27, %c0_28] : memref<8x64x1xf32, #tpu.memory_space<vmem>>, vector<1x64x1xf32>
    %71 = vector.shape_cast %70 : vector<1x64x1xf32> to vector<64x1xf32>
    %72 = vector.shape_cast %71 : vector<64x1xf32> to vector<1x64x1xf32>
    %73 = vector.extract_strided_slice %69 {offsets = [0, 0, 0], sizes = [2, 1, 64], strides = [1, 1, 1]} : vector<2x8x64xf32> to vector<2x1x64xf32>
    %74 = vector.broadcast %72 : vector<1x64x1xf32> to vector<2x64x64xf32>
    %75 = vector.broadcast %73 : vector<2x1x64xf32> to vector<2x64x64xf32>
    %76 = arith.mulf %74, %75 : vector<2x64x64xf32>
    %c1_29 = arith.constant 1 : index
    %c0_30 = arith.constant 0 : index
    %c0_31 = arith.constant 0 : index
    %77 = vector.load %arg7[%c1_29, %c0_30, %c0_31] : memref<8x64x1xf32, #tpu.memory_space<vmem>>, vector<1x64x1xf32>
    %78 = vector.shape_cast %77 : vector<1x64x1xf32> to vector<64x1xf32>
    %79 = vector.shape_cast %78 : vector<64x1xf32> to vector<1x64x1xf32>
    %80 = vector.extract_strided_slice %69 {offsets = [0, 1, 0], sizes = [2, 1, 64], strides = [1, 1, 1]} : vector<2x8x64xf32> to vector<2x1x64xf32>
    %81 = vector.broadcast %79 : vector<1x64x1xf32> to vector<2x64x64xf32>
    %82 = vector.broadcast %80 : vector<2x1x64xf32> to vector<2x64x64xf32>
    %83 = arith.mulf %81, %82 : vector<2x64x64xf32>
    %84 = arith.addf %76, %83 : vector<2x64x64xf32>
    %c2_32 = arith.constant 2 : index
    %c0_33 = arith.constant 0 : index
    %c0_34 = arith.constant 0 : index
    %85 = vector.load %arg7[%c2_32, %c0_33, %c0_34] : memref<8x64x1xf32, #tpu.memory_space<vmem>>, vector<1x64x1xf32>
    %86 = vector.shape_cast %85 : vector<1x64x1xf32> to vector<64x1xf32>
    %87 = vector.shape_cast %86 : vector<64x1xf32> to vector<1x64x1xf32>
    %88 = vector.extract_strided_slice %69 {offsets = [0, 2, 0], sizes = [2, 1, 64], strides = [1, 1, 1]} : vector<2x8x64xf32> to vector<2x1x64xf32>
    %89 = vector.broadcast %87 : vector<1x64x1xf32> to vector<2x64x64xf32>
    %90 = vector.broadcast %88 : vector<2x1x64xf32> to vector<2x64x64xf32>
    %91 = arith.mulf %89, %90 : vector<2x64x64xf32>
    %92 = arith.addf %84, %91 : vector<2x64x64xf32>
    %c3_35 = arith.constant 3 : index
    %c0_36 = arith.constant 0 : index
    %c0_37 = arith.constant 0 : index
    %93 = vector.load %arg7[%c3_35, %c0_36, %c0_37] : memref<8x64x1xf32, #tpu.memory_space<vmem>>, vector<1x64x1xf32>
    %94 = vector.shape_cast %93 : vector<1x64x1xf32> to vector<64x1xf32>
    %95 = vector.shape_cast %94 : vector<64x1xf32> to vector<1x64x1xf32>
    %96 = vector.extract_strided_slice %69 {offsets = [0, 3, 0], sizes = [2, 1, 64], strides = [1, 1, 1]} : vector<2x8x64xf32> to vector<2x1x64xf32>
    %97 = vector.broadcast %95 : vector<1x64x1xf32> to vector<2x64x64xf32>
    %98 = vector.broadcast %96 : vector<2x1x64xf32> to vector<2x64x64xf32>
    %99 = arith.mulf %97, %98 : vector<2x64x64xf32>
    %100 = arith.addf %92, %99 : vector<2x64x64xf32>
    %c4 = arith.constant 4 : index
    %c0_38 = arith.constant 0 : index
    %c0_39 = arith.constant 0 : index
    %101 = vector.load %arg7[%c4, %c0_38, %c0_39] : memref<8x64x1xf32, #tpu.memory_space<vmem>>, vector<1x64x1xf32>
    %102 = vector.shape_cast %101 : vector<1x64x1xf32> to vector<64x1xf32>
    %103 = vector.shape_cast %102 : vector<64x1xf32> to vector<1x64x1xf32>
    %104 = vector.extract_strided_slice %69 {offsets = [0, 4, 0], sizes = [2, 1, 64], strides = [1, 1, 1]} : vector<2x8x64xf32> to vector<2x1x64xf32>
    %105 = vector.broadcast %103 : vector<1x64x1xf32> to vector<2x64x64xf32>
    %106 = vector.broadcast %104 : vector<2x1x64xf32> to vector<2x64x64xf32>
    %107 = arith.mulf %105, %106 : vector<2x64x64xf32>
    %108 = arith.addf %100, %107 : vector<2x64x64xf32>
    %c5 = arith.constant 5 : index
    %c0_40 = arith.constant 0 : index
    %c0_41 = arith.constant 0 : index
    %109 = vector.load %arg7[%c5, %c0_40, %c0_41] : memref<8x64x1xf32, #tpu.memory_space<vmem>>, vector<1x64x1xf32>
    %110 = vector.shape_cast %109 : vector<1x64x1xf32> to vector<64x1xf32>
    %111 = vector.shape_cast %110 : vector<64x1xf32> to vector<1x64x1xf32>
    %112 = vector.extract_strided_slice %69 {offsets = [0, 5, 0], sizes = [2, 1, 64], strides = [1, 1, 1]} : vector<2x8x64xf32> to vector<2x1x64xf32>
    %113 = vector.broadcast %111 : vector<1x64x1xf32> to vector<2x64x64xf32>
    %114 = vector.broadcast %112 : vector<2x1x64xf32> to vector<2x64x64xf32>
    %115 = arith.mulf %113, %114 : vector<2x64x64xf32>
    %116 = arith.addf %108, %115 : vector<2x64x64xf32>
    %c6 = arith.constant 6 : index
    %c0_42 = arith.constant 0 : index
    %c0_43 = arith.constant 0 : index
    %117 = vector.load %arg7[%c6, %c0_42, %c0_43] : memref<8x64x1xf32, #tpu.memory_space<vmem>>, vector<1x64x1xf32>
    %118 = vector.shape_cast %117 : vector<1x64x1xf32> to vector<64x1xf32>
    %119 = vector.shape_cast %118 : vector<64x1xf32> to vector<1x64x1xf32>
    %120 = vector.extract_strided_slice %69 {offsets = [0, 6, 0], sizes = [2, 1, 64], strides = [1, 1, 1]} : vector<2x8x64xf32> to vector<2x1x64xf32>
    %121 = vector.broadcast %119 : vector<1x64x1xf32> to vector<2x64x64xf32>
    %122 = vector.broadcast %120 : vector<2x1x64xf32> to vector<2x64x64xf32>
    %123 = arith.mulf %121, %122 : vector<2x64x64xf32>
    %124 = arith.addf %116, %123 : vector<2x64x64xf32>
    %c7 = arith.constant 7 : index
    %c0_44 = arith.constant 0 : index
    %c0_45 = arith.constant 0 : index
    %125 = vector.load %arg7[%c7, %c0_44, %c0_45] : memref<8x64x1xf32, #tpu.memory_space<vmem>>, vector<1x64x1xf32>
    %126 = vector.shape_cast %125 : vector<1x64x1xf32> to vector<64x1xf32>
    %127 = vector.shape_cast %126 : vector<64x1xf32> to vector<1x64x1xf32>
    %128 = vector.extract_strided_slice %69 {offsets = [0, 7, 0], sizes = [2, 1, 64], strides = [1, 1, 1]} : vector<2x8x64xf32> to vector<2x1x64xf32>
    %129 = vector.broadcast %127 : vector<1x64x1xf32> to vector<2x64x64xf32>
    %130 = vector.broadcast %128 : vector<2x1x64xf32> to vector<2x64x64xf32>
    %131 = arith.mulf %129, %130 : vector<2x64x64xf32>
    %132 = arith.addf %124, %131 : vector<2x64x64xf32>
    %c0_46 = arith.constant 0 : index
    %c0_47 = arith.constant 0 : index
    %133 = vector.load %arg8[%c0_46, %c0_47] : memref<64x1xf32, #tpu.memory_space<vmem>>, vector<64x1xf32>
    %134 = vector.shape_cast %133 : vector<64x1xf32> to vector<1x64x1xf32>
    %135 = vector.broadcast %134 : vector<1x64x1xf32> to vector<2x64x64xf32>
    %136 = arith.addf %132, %135 : vector<2x64x64xf32>
    %c0_48 = arith.constant 0 : index
    %c0_49 = arith.constant 0 : index
    %137 = vector.load %arg12[%c0_48, %c0_49] : memref<2x64xf32, #tpu.memory_space<vmem>>, vector<2x64xf32>
    %cst_50 = arith.constant dense<0xFF800000> : vector<2x64xf32>
    %138 = vector.multi_reduction <maximumf>, %136, %cst_50 [2] : vector<2x64x64xf32> to vector<2x64xf32>
    %139 = arith.maximumf %137, %138 : vector<2x64xf32>
    %c0_51 = arith.constant 0 : index
    %c0_52 = arith.constant 0 : index
    %140 = vector.load %arg12[%c0_51, %c0_52] : memref<2x64xf32, #tpu.memory_space<vmem>>, vector<2x64xf32>
    tpu.vector_store %arg12[%c0_51, %c0_52], %139 {strides = array<i32>} : memref<2x64xf32, #tpu.memory_space<vmem>>, vector<2x64xf32>,
    %c0_i32_53 = arith.constant 0 : i32
    %141 = arith.cmpi eq, %arg1, %c0_i32_53 : i32
    %142 = arith.extui %141 : i1 to i32
    %c0_i32_54 = arith.constant 0 : i32
    %143 = arith.cmpi ne, %142, %c0_i32_54 : i32
    scf.if %143 {
      %c0_55 = arith.constant 0 : index
      %c0_56 = arith.constant 0 : index
      %144 = vector.load %arg12[%c0_55, %c0_56] : memref<2x64xf32, #tpu.memory_space<vmem>>, vector<2x64xf32>
      %c0_57 = arith.constant 0 : index
      %c0_58 = arith.constant 0 : index
      %145 = vector.load %arg9[%c0_57, %c0_58] : memref<64x128xf32, #tpu.memory_space<vmem>>, vector<64x128xf32>
      %cst_59 = arith.constant dense<0.000000e+00> : vector<2x128xf32>
      %146 = tpu.matmul %144, %145, %cst_59 {dimension_numbers = #tpu.dot_dimension_numbers<[1], [0], [0], [1], [0, 0, 1, 1], [], []>} : vector<2x64xf32>, vector<64x128xf32>, vector<2x128xf32> -> vector<2x128xf32>
      %c0_60 = arith.constant 0 : index
      %c0_61 = arith.constant 0 : index
      %147 = vector.load %arg10[%c0_60, %c0_61] : memref<1x128xf32, #tpu.memory_space<vmem>>, vector<1x128xf32>
      %148 = vector.broadcast %147 : vector<1x128xf32> to vector<2x128xf32>
      %149 = arith.addf %146, %148 : vector<2x128xf32>
      %cst_62 = arith.constant 0.000000e+00 : f32
      %150 = vector.broadcast %cst_62 : f32 to vector<2x128xf32>
      %151 = arith.maximumf %149, %150 : vector<2x128xf32>
      %c0_63 = arith.constant 0 : index
      %c0_64 = arith.constant 0 : index
      %152 = vector.load %arg11[%c0_63, %c0_64] : memref<2x128xf32, #tpu.memory_space<vmem>>, vector<2x128xf32>
      tpu.vector_store %arg11[%c0_63, %c0_64], %151 {strides = array<i32>} : memref<2x128xf32, #tpu.memory_space<vmem>>, vector<2x128xf32>,
    } else {
    }
    return
  }
  func.func @transform_0(%arg0: i32, %arg1: i32) -> (i32, i32, i32) {
    %c0_i32 = arith.constant 0 : i32
    %c0_i32_0 = arith.constant 0 : i32
    return %arg0, %c0_i32, %arg1 : i32, i32, i32
  }
  func.func @transform_1(%arg0: i32, %arg1: i32) -> (i32, i32, i32) {
    %c0_i32 = arith.constant 0 : i32
    %c0_i32_0 = arith.constant 0 : i32
    %c0_i32_1 = arith.constant 0 : i32
    %c0_i32_2 = arith.constant 0 : i32
    return %c0_i32, %c0_i32_0, %c0_i32_1 : i32, i32, i32
  }
  func.func @transform_2(%arg0: i32, %arg1: i32) -> (i32, i32) {
    %c0_i32 = arith.constant 0 : i32
    %c0_i32_0 = arith.constant 0 : i32
    %c0_i32_1 = arith.constant 0 : i32
    return %c0_i32, %c0_i32_0 : i32, i32
  }
  func.func @transform_3(%arg0: i32, %arg1: i32) -> (i32, i32, i32) {
    %c0_i32 = arith.constant 0 : i32
    %c0_i32_0 = arith.constant 0 : i32
    %c0_i32_1 = arith.constant 0 : i32
    %c0_i32_2 = arith.constant 0 : i32
    return %c0_i32, %c0_i32_0, %c0_i32_1 : i32, i32, i32
  }
  func.func @transform_4(%arg0: i32, %arg1: i32) -> (i32, i32) {
    %c0_i32 = arith.constant 0 : i32
    %c0_i32_0 = arith.constant 0 : i32
    %c0_i32_1 = arith.constant 0 : i32
    return %c0_i32, %c0_i32_0 : i32, i32
  }
  func.func @transform_5(%arg0: i32, %arg1: i32) -> (i32, i32, i32) {
    %c0_i32 = arith.constant 0 : i32
    %c0_i32_0 = arith.constant 0 : i32
    %c0_i32_1 = arith.constant 0 : i32
    %c0_i32_2 = arith.constant 0 : i32
    return %c0_i32, %c0_i32_0, %c0_i32_1 : i32, i32, i32
  }
  func.func @transform_6(%arg0: i32, %arg1: i32) -> (i32, i32) {
    %c0_i32 = arith.constant 0 : i32
    %c0_i32_0 = arith.constant 0 : i32
    %c0_i32_1 = arith.constant 0 : i32
    return %c0_i32, %c0_i32_0 : i32, i32
  }
  func.func @transform_7(%arg0: i32, %arg1: i32) -> (i32, i32) {
    %c0_i32 = arith.constant 0 : i32
    %c0_i32_0 = arith.constant 0 : i32
    %c0_i32_1 = arith.constant 0 : i32
    return %c0_i32, %c0_i32_0 : i32, i32
  }
  func.func @transform_8(%arg0: i32, %arg1: i32) -> (i32, i32) {
    %c0_i32 = arith.constant 0 : i32
    %c0_i32_0 = arith.constant 0 : i32
    %c0_i32_1 = arith.constant 0 : i32
    return %c0_i32, %c0_i32_0 : i32, i32
  }
  func.func @transform_9(%arg0: i32, %arg1: i32) -> (i32, i32) {
    %c0_i32 = arith.constant 0 : i32
    %c0_i32_0 = arith.constant 0 : i32
    return %arg0, %c0_i32 : i32, i32
  }
}

module attributes {stable_mosaic.version = 11 : i64} {
  func.func @point_encoder_kernel(%arg0: i32, %arg1: i32, %arg2: memref<2x3x64xf32, #tpu.memory_space<vmem>>, %arg3: memref<3x4x1xf32, #tpu.memory_space<vmem>>, %arg4: memref<4x1xf32, #tpu.memory_space<vmem>>, %arg5: memref<4x8x1xf32, #tpu.memory_space<vmem>>, %arg6: memref<8x1xf32, #tpu.memory_space<vmem>>, %arg7: memref<8x64x1xf32, #tpu.memory_space<vmem>>, %arg8: memref<64x1xf32, #tpu.memory_space<vmem>>, %arg9: memref<64x128xf32, #tpu.memory_space<vmem>>, %arg10: memref<1x128xf32, #tpu.memory_space<vmem>>, %arg11: memref<2x128xf32, #tpu.memory_space<vmem>>, %arg12: memref<2x64xf32, #tpu.memory_space<vmem>>) attributes {dimension_semantics = [#tpu.dimension_semantics<parallel>, #tpu.dimension_semantics<arbitrary>], iteration_bounds = array<i64: 1, 1>, scalar_prefetch = 0 : i64, scratch_operands = 1 : i64, tpu.core_type = #tpu.core_type<tc>, window_params = [{transform_indices = @transform_0, window_bounds = array<i64: 2, 3, 64>}, {pipeline_mode = #tpu.pipeline_mode<synchronous>, transform_indices = @transform_1, window_bounds = array<i64: 3, 4, 1>}, {pipeline_mode = #tpu.pipeline_mode<synchronous>, transform_indices = @transform_2, window_bounds = array<i64: 4, 1>}, {pipeline_mode = #tpu.pipeline_mode<synchronous>, transform_indices = @transform_3, window_bounds = array<i64: 4, 8, 1>}, {pipeline_mode = #tpu.pipeline_mode<synchronous>, transform_indices = @transform_4, window_bounds = array<i64: 8, 1>}, {pipeline_mode = #tpu.pipeline_mode<synchronous>, transform_indices = @transform_5, window_bounds = array<i64: 8, 64, 1>}, {pipeline_mode = #tpu.pipeline_mode<synchronous>, transform_indices = @transform_6, window_bounds = array<i64: 64, 1>}, {pipeline_mode = #tpu.pipeline_mode<synchronous>, transform_indices = @transform_7, window_bounds = array<i64: 64, 128>}, {pipeline_mode = #tpu.pipeline_mode<synchronous>, transform_indices = @transform_8, window_bounds = array<i64: 1, 128>}, {transform_indices = @transform_9, window_bounds = array<i64: 2, 128>}]} {
    %c0_i32 = arith.constant 0 : i32
    %0 = arith.cmpi eq, %arg1, %c0_i32 : i32
    %1 = arith.extui %0 : i1 to i32
    %c0_i32_0 = arith.constant 0 : i32
    %2 = arith.cmpi ne, %1, %c0_i32_0 : i32
    scf.if %2 {
      %cst_55 = arith.constant 0xFF800000 : f32
      %144 = vector.broadcast %cst_55 : f32 to vector<2x64xf32>
      %c0_56 = arith.constant 0 : index
      %c0_57 = arith.constant 0 : index
      %145 = vector.load %arg12[%c0_56, %c0_57] : memref<2x64xf32, #tpu.memory_space<vmem>>, vector<2x64xf32>
      tpu.vector_store %arg12[%c0_56, %c0_57], %144 {strides = array<i32>} : memref<2x64xf32, #tpu.memory_space<vmem>>, vector<2x64xf32>,
    } else {
    }
    %c0 = arith.constant 0 : index
    %c0_1 = arith.constant 0 : index
    %c0_2 = arith.constant 0 : index
    %3 = vector.load %arg2[%c0, %c0_1, %c0_2] : memref<2x3x64xf32, #tpu.memory_space<vmem>>, vector<2x3x64xf32>
    %c0_3 = arith.constant 0 : index
    %c0_4 = arith.constant 0 : index
    %c0_5 = arith.constant 0 : index
    %4 = vector.load %arg3[%c0_3, %c0_4, %c0_5] : memref<3x4x1xf32, #tpu.memory_space<vmem>>, vector<1x4x1xf32>
    %5 = vector.shape_cast %4 : vector<1x4x1xf32> to vector<4x1xf32>
    %6 = vector.shape_cast %5 : vector<4x1xf32> to vector<1x4x1xf32>
    %7 = vector.extract_strided_slice %3 {offsets = [0, 0, 0], sizes = [2, 1, 64], strides = [1, 1, 1]} : vector<2x3x64xf32> to vector<2x1x64xf32>
    %8 = vector.broadcast %6 : vector<1x4x1xf32> to vector<2x4x64xf32>
    %9 = vector.broadcast %7 : vector<2x1x64xf32> to vector<2x4x64xf32>
    %10 = arith.mulf %8, %9 : vector<2x4x64xf32>
    %c1 = arith.constant 1 : index
    %c0_6 = arith.constant 0 : index
    %c0_7 = arith.constant 0 : index
    %11 = vector.load %arg3[%c1, %c0_6, %c0_7] : memref<3x4x1xf32, #tpu.memory_space<vmem>>, vector<1x4x1xf32>
    %12 = vector.shape_cast %11 : vector<1x4x1xf32> to vector<4x1xf32>
    %13 = vector.shape_cast %12 : vector<4x1xf32> to vector<1x4x1xf32>
    %14 = vector.extract_strided_slice %3 {offsets = [0, 1, 0], sizes = [2, 1, 64], strides = [1, 1, 1]} : vector<2x3x64xf32> to vector<2x1x64xf32>
    %15 = vector.broadcast %13 : vector<1x4x1xf32> to vector<2x4x64xf32>
    %16 = vector.broadcast %14 : vector<2x1x64xf32> to vector<2x4x64xf32>
    %17 = arith.mulf %15, %16 : vector<2x4x64xf32>
    %18 = arith.addf %10, %17 : vector<2x4x64xf32>
    %c2 = arith.constant 2 : index
    %c0_8 = arith.constant 0 : index
    %c0_9 = arith.constant 0 : index
    %19 = vector.load %arg3[%c2, %c0_8, %c0_9] : memref<3x4x1xf32, #tpu.memory_space<vmem>>, vector<1x4x1xf32>
    %20 = vector.shape_cast %19 : vector<1x4x1xf32> to vector<4x1xf32>
    %21 = vector.shape_cast %20 : vector<4x1xf32> to vector<1x4x1xf32>
    %22 = vector.extract_strided_slice %3 {offsets = [0, 2, 0], sizes = [2, 1, 64], strides = [1, 1, 1]} : vector<2x3x64xf32> to vector<2x1x64xf32>
    %23 = vector.broadcast %21 : vector<1x4x1xf32> to vector<2x4x64xf32>
    %24 = vector.broadcast %22 : vector<2x1x64xf32> to vector<2x4x64xf32>
    %25 = arith.mulf %23, %24 : vector<2x4x64xf32>
    %26 = arith.addf %18, %25 : vector<2x4x64xf32>
    %c0_10 = arith.constant 0 : index
    %c0_11 = arith.constant 0 : index
    %27 = vector.load %arg4[%c0_10, %c0_11] : memref<4x1xf32, #tpu.memory_space<vmem>>, vector<4x1xf32>
    %28 = vector.shape_cast %27 : vector<4x1xf32> to vector<1x4x1xf32>
    %29 = vector.broadcast %28 : vector<1x4x1xf32> to vector<2x4x64xf32>
    %30 = arith.addf %26, %29 : vector<2x4x64xf32>
    %cst = arith.constant 0.000000e+00 : f32
    %31 = vector.broadcast %cst : f32 to vector<2x4x64xf32>
    %32 = arith.maximumf %30, %31 : vector<2x4x64xf32>
    %c0_12 = arith.constant 0 : index
    %c0_13 = arith.constant 0 : index
    %c0_14 = arith.constant 0 : index
    %33 = vector.load %arg5[%c0_12, %c0_13, %c0_14] : memref<4x8x1xf32, #tpu.memory_space<vmem>>, vector<1x8x1xf32>
    %34 = vector.shape_cast %33 : vector<1x8x1xf32> to vector<8x1xf32>
    %35 = vector.shape_cast %34 : vector<8x1xf32> to vector<1x8x1xf32>
    %36 = vector.extract_strided_slice %32 {offsets = [0, 0, 0], sizes = [2, 1, 64], strides = [1, 1, 1]} : vector<2x4x64xf32> to vector<2x1x64xf32>
    %37 = vector.broadcast %35 : vector<1x8x1xf32> to vector<2x8x64xf32>
    %38 = vector.broadcast %36 : vector<2x1x64xf32> to vector<2x8x64xf32>
    %39 = arith.mulf %37, %38 : vector<2x8x64xf32>
    %c1_15 = arith.constant 1 : index
    %c0_16 = arith.constant 0 : index
    %c0_17 = arith.constant 0 : index
    %40 = vector.load %arg5[%c1_15, %c0_16, %c0_17] : memref<4x8x1xf32, #tpu.memory_space<vmem>>, vector<1x8x1xf32>
    %41 = vector.shape_cast %40 : vector<1x8x1xf32> to vector<8x1xf32>
    %42 = vector.shape_cast %41 : vector<8x1xf32> to vector<1x8x1xf32>
    %43 = vector.extract_strided_slice %32 {offsets = [0, 1, 0], sizes = [2, 1, 64], strides = [1, 1, 1]} : vector<2x4x64xf32> to vector<2x1x64xf32>
    %44 = vector.broadcast %42 : vector<1x8x1xf32> to vector<2x8x64xf32>
    %45 = vector.broadcast %43 : vector<2x1x64xf32> to vector<2x8x64xf32>
    %46 = arith.mulf %44, %45 : vector<2x8x64xf32>
    %47 = arith.addf %39, %46 : vector<2x8x64xf32>
    %c2_18 = arith.constant 2 : index
    %c0_19 = arith.constant 0 : index
    %c0_20 = arith.constant 0 : index
    %48 = vector.load %arg5[%c2_18, %c0_19, %c0_20] : memref<4x8x1xf32, #tpu.memory_space<vmem>>, vector<1x8x1xf32>
    %49 = vector.shape_cast %48 : vector<1x8x1xf32> to vector<8x1xf32>
    %50 = vector.shape_cast %49 : vector<8x1xf32> to vector<1x8x1xf32>
    %51 = vector.extract_strided_slice %32 {offsets = [0, 2, 0], sizes = [2, 1, 64], strides = [1, 1, 1]} : vector<2x4x64xf32> to vector<2x1x64xf32>
    %52 = vector.broadcast %50 : vector<1x8x1xf32> to vector<2x8x64xf32>
    %53 = vector.broadcast %51 : vector<2x1x64xf32> to vector<2x8x64xf32>
    %54 = arith.mulf %52, %53 : vector<2x8x64xf32>
    %55 = arith.addf %47, %54 : vector<2x8x64xf32>
    %c3 = arith.constant 3 : index
    %c0_21 = arith.constant 0 : index
    %c0_22 = arith.constant 0 : index
    %56 = vector.load %arg5[%c3, %c0_21, %c0_22] : memref<4x8x1xf32, #tpu.memory_space<vmem>>, vector<1x8x1xf32>
    %57 = vector.shape_cast %56 : vector<1x8x1xf32> to vector<8x1xf32>
    %58 = vector.shape_cast %57 : vector<8x1xf32> to vector<1x8x1xf32>
    %59 = vector.extract_strided_slice %32 {offsets = [0, 3, 0], sizes = [2, 1, 64], strides = [1, 1, 1]} : vector<2x4x64xf32> to vector<2x1x64xf32>
    %60 = vector.broadcast %58 : vector<1x8x1xf32> to vector<2x8x64xf32>
    %61 = vector.broadcast %59 : vector<2x1x64xf32> to vector<2x8x64xf32>
    %62 = arith.mulf %60, %61 : vector<2x8x64xf32>
    %63 = arith.addf %55, %62 : vector<2x8x64xf32>
    %c0_23 = arith.constant 0 : index
    %c0_24 = arith.constant 0 : index
    %64 = vector.load %arg6[%c0_23, %c0_24] : memref<8x1xf32, #tpu.memory_space<vmem>>, vector<8x1xf32>
    %65 = vector.shape_cast %64 : vector<8x1xf32> to vector<1x8x1xf32>
    %66 = vector.broadcast %65 : vector<1x8x1xf32> to vector<2x8x64xf32>
    %67 = arith.addf %63, %66 : vector<2x8x64xf32>
    %cst_25 = arith.constant 0.000000e+00 : f32
    %68 = vector.broadcast %cst_25 : f32 to vector<2x8x64xf32>
    %69 = arith.maximumf %67, %68 : vector<2x8x64xf32>
    %c0_26 = arith.constant 0 : index
    %c0_27 = arith.constant 0 : index
    %c0_28 = arith.constant 0 : index
    %70 = vector.load %arg7[%c0_26, %c0_27, %c0_28] : memref<8x64x1xf32, #tpu.memory_space<vmem>>, vector<1x64x1xf32>
    %71 = vector.shape_cast %70 : vector<1x64x1xf32> to vector<64x1xf32>
    %72 = vector.shape_cast %71 : vector<64x1xf32> to vector<1x64x1xf32>
    %73 = vector.extract_strided_slice %69 {offsets = [0, 0, 0], sizes = [2, 1, 64], strides = [1, 1, 1]} : vector<2x8x64xf32> to vector<2x1x64xf32>
    %74 = vector.broadcast %72 : vector<1x64x1xf32> to vector<2x64x64xf32>
    %75 = vector.broadcast %73 : vector<2x1x64xf32> to vector<2x64x64xf32>
    %76 = arith.mulf %74, %75 : vector<2x64x64xf32>
    %c1_29 = arith.constant 1 : index
    %c0_30 = arith.constant 0 : index
    %c0_31 = arith.constant 0 : index
    %77 = vector.load %arg7[%c1_29, %c0_30, %c0_31] : memref<8x64x1xf32, #tpu.memory_space<vmem>>, vector<1x64x1xf32>
    %78 = vector.shape_cast %77 : vector<1x64x1xf32> to vector<64x1xf32>
    %79 = vector.shape_cast %78 : vector<64x1xf32> to vector<1x64x1xf32>
    %80 = vector.extract_strided_slice %69 {offsets = [0, 1, 0], sizes = [2, 1, 64], strides = [1, 1, 1]} : vector<2x8x64xf32> to vector<2x1x64xf32>
    %81 = vector.broadcast %79 : vector<1x64x1xf32> to vector<2x64x64xf32>
    %82 = vector.broadcast %80 : vector<2x1x64xf32> to vector<2x64x64xf32>
    %83 = arith.mulf %81, %82 : vector<2x64x64xf32>
    %84 = arith.addf %76, %83 : vector<2x64x64xf32>
    %c2_32 = arith.constant 2 : index
    %c0_33 = arith.constant 0 : index
    %c0_34 = arith.constant 0 : index
    %85 = vector.load %arg7[%c2_32, %c0_33, %c0_34] : memref<8x64x1xf32, #tpu.memory_space<vmem>>, vector<1x64x1xf32>
    %86 = vector.shape_cast %85 : vector<1x64x1xf32> to vector<64x1xf32>
    %87 = vector.shape_cast %86 : vector<64x1xf32> to vector<1x64x1xf32>
    %88 = vector.extract_strided_slice %69 {offsets = [0, 2, 0], sizes = [2, 1, 64], strides = [1, 1, 1]} : vector<2x8x64xf32> to vector<2x1x64xf32>
    %89 = vector.broadcast %87 : vector<1x64x1xf32> to vector<2x64x64xf32>
    %90 = vector.broadcast %88 : vector<2x1x64xf32> to vector<2x64x64xf32>
    %91 = arith.mulf %89, %90 : vector<2x64x64xf32>
    %92 = arith.addf %84, %91 : vector<2x64x64xf32>
    %c3_35 = arith.constant 3 : index
    %c0_36 = arith.constant 0 : index
    %c0_37 = arith.constant 0 : index
    %93 = vector.load %arg7[%c3_35, %c0_36, %c0_37] : memref<8x64x1xf32, #tpu.memory_space<vmem>>, vector<1x64x1xf32>
    %94 = vector.shape_cast %93 : vector<1x64x1xf32> to vector<64x1xf32>
    %95 = vector.shape_cast %94 : vector<64x1xf32> to vector<1x64x1xf32>
    %96 = vector.extract_strided_slice %69 {offsets = [0, 3, 0], sizes = [2, 1, 64], strides = [1, 1, 1]} : vector<2x8x64xf32> to vector<2x1x64xf32>
    %97 = vector.broadcast %95 : vector<1x64x1xf32> to vector<2x64x64xf32>
    %98 = vector.broadcast %96 : vector<2x1x64xf32> to vector<2x64x64xf32>
    %99 = arith.mulf %97, %98 : vector<2x64x64xf32>
    %100 = arith.addf %92, %99 : vector<2x64x64xf32>
    %c4 = arith.constant 4 : index
    %c0_38 = arith.constant 0 : index
    %c0_39 = arith.constant 0 : index
    %101 = vector.load %arg7[%c4, %c0_38, %c0_39] : memref<8x64x1xf32, #tpu.memory_space<vmem>>, vector<1x64x1xf32>
    %102 = vector.shape_cast %101 : vector<1x64x1xf32> to vector<64x1xf32>
    %103 = vector.shape_cast %102 : vector<64x1xf32> to vector<1x64x1xf32>
    %104 = vector.extract_strided_slice %69 {offsets = [0, 4, 0], sizes = [2, 1, 64], strides = [1, 1, 1]} : vector<2x8x64xf32> to vector<2x1x64xf32>
    %105 = vector.broadcast %103 : vector<1x64x1xf32> to vector<2x64x64xf32>
    %106 = vector.broadcast %104 : vector<2x1x64xf32> to vector<2x64x64xf32>
    %107 = arith.mulf %105, %106 : vector<2x64x64xf32>
    %108 = arith.addf %100, %107 : vector<2x64x64xf32>
    %c5 = arith.constant 5 : index
    %c0_40 = arith.constant 0 : index
    %c0_41 = arith.constant 0 : index
    %109 = vector.load %arg7[%c5, %c0_40, %c0_41] : memref<8x64x1xf32, #tpu.memory_space<vmem>>, vector<1x64x1xf32>
    %110 = vector.shape_cast %109 : vector<1x64x1xf32> to vector<64x1xf32>
    %111 = vector.shape_cast %110 : vector<64x1xf32> to vector<1x64x1xf32>
    %112 = vector.extract_strided_slice %69 {offsets = [0, 5, 0], sizes = [2, 1, 64], strides = [1, 1, 1]} : vector<2x8x64xf32> to vector<2x1x64xf32>
    %113 = vector.broadcast %111 : vector<1x64x1xf32> to vector<2x64x64xf32>
    %114 = vector.broadcast %112 : vector<2x1x64xf32> to vector<2x64x64xf32>
    %115 = arith.mulf %113, %114 : vector<2x64x64xf32>
    %116 = arith.addf %108, %115 : vector<2x64x64xf32>
    %c6 = arith.constant 6 : index
    %c0_42 = arith.constant 0 : index
    %c0_43 = arith.constant 0 : index
    %117 = vector.load %arg7[%c6, %c0_42, %c0_43] : memref<8x64x1xf32, #tpu.memory_space<vmem>>, vector<1x64x1xf32>
    %118 = vector.shape_cast %117 : vector<1x64x1xf32> to vector<64x1xf32>
    %119 = vector.shape_cast %118 : vector<64x1xf32> to vector<1x64x1xf32>
    %120 = vector.extract_strided_slice %69 {offsets = [0, 6, 0], sizes = [2, 1, 64], strides = [1, 1, 1]} : vector<2x8x64xf32> to vector<2x1x64xf32>
    %121 = vector.broadcast %119 : vector<1x64x1xf32> to vector<2x64x64xf32>
    %122 = vector.broadcast %120 : vector<2x1x64xf32> to vector<2x64x64xf32>
    %123 = arith.mulf %121, %122 : vector<2x64x64xf32>
    %124 = arith.addf %116, %123 : vector<2x64x64xf32>
    %c7 = arith.constant 7 : index
    %c0_44 = arith.constant 0 : index
    %c0_45 = arith.constant 0 : index
    %125 = vector.load %arg7[%c7, %c0_44, %c0_45] : memref<8x64x1xf32, #tpu.memory_space<vmem>>, vector<1x64x1xf32>
    %126 = vector.shape_cast %125 : vector<1x64x1xf32> to vector<64x1xf32>
    %127 = vector.shape_cast %126 : vector<64x1xf32> to vector<1x64x1xf32>
    %128 = vector.extract_strided_slice %69 {offsets = [0, 7, 0], sizes = [2, 1, 64], strides = [1, 1, 1]} : vector<2x8x64xf32> to vector<2x1x64xf32>
    %129 = vector.broadcast %127 : vector<1x64x1xf32> to vector<2x64x64xf32>
    %130 = vector.broadcast %128 : vector<2x1x64xf32> to vector<2x64x64xf32>
    %131 = arith.mulf %129, %130 : vector<2x64x64xf32>
    %132 = arith.addf %124, %131 : vector<2x64x64xf32>
    %c0_46 = arith.constant 0 : index
    %c0_47 = arith.constant 0 : index
    %133 = vector.load %arg8[%c0_46, %c0_47] : memref<64x1xf32, #tpu.memory_space<vmem>>, vector<64x1xf32>
    %134 = vector.shape_cast %133 : vector<64x1xf32> to vector<1x64x1xf32>
    %135 = vector.broadcast %134 : vector<1x64x1xf32> to vector<2x64x64xf32>
    %136 = arith.addf %132, %135 : vector<2x64x64xf32>
    %c0_48 = arith.constant 0 : index
    %c0_49 = arith.constant 0 : index
    %137 = vector.load %arg12[%c0_48, %c0_49] : memref<2x64xf32, #tpu.memory_space<vmem>>, vector<2x64xf32>
    %cst_50 = arith.constant dense<0xFF800000> : vector<2x64xf32>
    %138 = vector.multi_reduction <maximumf>, %136, %cst_50 [2] : vector<2x64x64xf32> to vector<2x64xf32>
    %139 = arith.maximumf %137, %138 : vector<2x64xf32>
    %c0_51 = arith.constant 0 : index
    %c0_52 = arith.constant 0 : index
    %140 = vector.load %arg12[%c0_51, %c0_52] : memref<2x64xf32, #tpu.memory_space<vmem>>, vector<2x64xf32>
    tpu.vector_store %arg12[%c0_51, %c0_52], %139 {strides = array<i32>} : memref<2x64xf32, #tpu.memory_space<vmem>>, vector<2x64xf32>,
    %c0_i32_53 = arith.constant 0 : i32
    %141 = arith.cmpi eq, %arg1, %c0_i32_53 : i32
    %142 = arith.extui %141 : i1 to i32
    %c0_i32_54 = arith.constant 0 : i32
    %143 = arith.cmpi ne, %142, %c0_i32_54 : i32
    scf.if %143 {
      %c0_55 = arith.constant 0 : index
      %c0_56 = arith.constant 0 : index
      %144 = vector.load %arg12[%c0_55, %c0_56] : memref<2x64xf32, #tpu.memory_space<vmem>>, vector<2x64xf32>
      %c0_57 = arith.constant 0 : index
      %c0_58 = arith.constant 0 : index
      %145 = vector.load %arg9[%c0_57, %c0_58] : memref<64x128xf32, #tpu.memory_space<vmem>>, vector<64x128xf32>
      %cst_59 = arith.constant dense<0.000000e+00> : vector<2x128xf32>
      %146 = tpu.matmul %144, %145, %cst_59 {dimension_numbers = #tpu.dot_dimension_numbers<[1], [0], [0], [1], [0, 0, 1, 1], [], []>} : vector<2x64xf32>, vector<64x128xf32>, vector<2x128xf32> -> vector<2x128xf32>
      %c0_60 = arith.constant 0 : index
      %c0_61 = arith.constant 0 : index
      %147 = vector.load %arg10[%c0_60, %c0_61] : memref<1x128xf32, #tpu.memory_space<vmem>>, vector<1x128xf32>
      %148 = vector.broadcast %147 : vector<1x128xf32> to vector<2x128xf32>
      %149 = arith.addf %146, %148 : vector<2x128xf32>
      %cst_62 = arith.constant 0.000000e+00 : f32
      %150 = vector.broadcast %cst_62 : f32 to vector<2x128xf32>
      %151 = arith.maximumf %149, %150 : vector<2x128xf32>
      %c0_63 = arith.constant 0 : index
      %c0_64 = arith.constant 0 : index
      %152 = vector.load %arg11[%c0_63, %c0_64] : memref<2x128xf32, #tpu.memory_space<vmem>>, vector<2x128xf32>
      tpu.vector_store %arg11[%c0_63, %c0_64], %151 {strides = array<i32>} : memref<2x128xf32, #tpu.memory_space<vmem>>, vector<2x128xf32>,
    } else {
    }
    return
  }
  func.func @transform_0(%arg0: i32, %arg1: i32) -> (i32, i32, i32) {
    %c0_i32 = arith.constant 0 : i32
    %c0_i32_0 = arith.constant 0 : i32
    return %arg0, %c0_i32, %arg1 : i32, i32, i32
  }
  func.func @transform_1(%arg0: i32, %arg1: i32) -> (i32, i32, i32) {
    %c0_i32 = arith.constant 0 : i32
    %c0_i32_0 = arith.constant 0 : i32
    %c0_i32_1 = arith.constant 0 : i32
    %c0_i32_2 = arith.constant 0 : i32
    return %c0_i32, %c0_i32_0, %c0_i32_1 : i32, i32, i32
  }
  func.func @transform_2(%arg0: i32, %arg1: i32) -> (i32, i32) {
    %c0_i32 = arith.constant 0 : i32
    %c0_i32_0 = arith.constant 0 : i32
    %c0_i32_1 = arith.constant 0 : i32
    return %c0_i32, %c0_i32_0 : i32, i32
  }
  func.func @transform_3(%arg0: i32, %arg1: i32) -> (i32, i32, i32) {
    %c0_i32 = arith.constant 0 : i32
    %c0_i32_0 = arith.constant 0 : i32
    %c0_i32_1 = arith.constant 0 : i32
    %c0_i32_2 = arith.constant 0 : i32
    return %c0_i32, %c0_i32_0, %c0_i32_1 : i32, i32, i32
  }
  func.func @transform_4(%arg0: i32, %arg1: i32) -> (i32, i32) {
    %c0_i32 = arith.constant 0 : i32
    %c0_i32_0 = arith.constant 0 : i32
    %c0_i32_1 = arith.constant 0 : i32
    return %c0_i32, %c0_i32_0 : i32, i32
  }
  func.func @transform_5(%arg0: i32, %arg1: i32) -> (i32, i32, i32) {
    %c0_i32 = arith.constant 0 : i32
    %c0_i32_0 = arith.constant 0 : i32
    %c0_i32_1 = arith.constant 0 : i32
    %c0_i32_2 = arith.constant 0 : i32
    return %c0_i32, %c0_i32_0, %c0_i32_1 : i32, i32, i32
  }
  func.func @transform_6(%arg0: i32, %arg1: i32) -> (i32, i32) {
    %c0_i32 = arith.constant 0 : i32
    %c0_i32_0 = arith.constant 0 : i32
    %c0_i32_1 = arith.constant 0 : i32
    return %c0_i32, %c0_i32_0 : i32, i32
  }
  func.func @transform_7(%arg0: i32, %arg1: i32) -> (i32, i32) {
    %c0_i32 = arith.constant 0 : i32
    %c0_i32_0 = arith.constant 0 : i32
    %c0_i32_1 = arith.constant 0 : i32
    return %c0_i32, %c0_i32_0 : i32, i32
  }
  func.func @transform_8(%arg0: i32, %arg1: i32) -> (i32, i32) {
    %c0_i32 = arith.constant 0 : i32
    %c0_i32_0 = arith.constant 0 : i32
    %c0_i32_1 = arith.constant 0 : i32
    return %c0_i32, %c0_i32_0 : i32, i32
  }
  func.func @transform_9(%arg0: i32, %arg1: i32) -> (i32, i32) {
    %c0_i32 = arith.constant 0 : i32
    %c0_i32_0 = arith.constant 0 : i32
    return %arg0, %c0_i32 : i32, i32
  }
}

</mosaic_0001>

<bundles_post_ra>
// kernel: tpu_custom_call.1
= control target key start
LH: loop header
LB: loop body
LE: loop exit
PB: predicated region body
PF: predicated region fallthrough
CT: control target
= control target key end

     0   :  { %v1356_v2 = vmov 0   ;;  %s1960_s0 = inlined_call_operand.vmem [shape: f32[2,3,64], index: 0, kind: input, shape index: {}]   ;;  %s1961_s1 = inlined_call_operand.vmem [shape: f32[3,4,1], index: 1, kind: input, shape index: {}]   ;;  %s1962_s2 = inlined_call_operand.vmem [shape: f32[4,1], index: 2, kind: input, shape index: {}]   ;;  %s1963_s3 = inlined_call_operand.vmem [shape: f32[4,8,1], index: 3, kind: input, shape index: {}]   ;;  %s1964_s4 = inlined_call_operand.vmem [shape: f32[8,1], index: 4, kind: input, shape index: {}]   ;;  %s1965_s5 = inlined_call_operand.vmem [shape: f32[8,64,1], index: 5, kind: input, shape index: {}]   ;;  %s1966_s6 = inlined_call_operand.vmem [shape: f32[64,1], index: 6, kind: input, shape index: {}]   ;;  %s1967_s7 = inlined_call_operand.vmem [shape: f32[64,128], index: 7, kind: input, shape index: {}]   ;;  %s1968_s8 = inlined_call_operand.vmem [shape: f32[1,128], index: 8, kind: input, shape index: {}]   ;;  %s1969_s9 = inlined_call_operand.hbm [shape: f32[2,128], index: 9, kind: output, shape index: {}]  }
   0x1   :  { %v1222_v0 = vld [vmem:[%s1961_s1 + $0x8] sm:$0xf]  ;;  %v41_v1 = vld [vmem:[%s1961_s1] sm:$0xf]  ;;  %1331 = vset.pattern.permute.xlu1 %v1356_v2  ;;  %1330 = vset.pattern.permute.xlu0 %v1356_v2  ;;  %v1221_v4 = vld [vmem:[%s1961_s1 + $0x4] sm:$0xf] }
   0x2   :  { %80 = vperm.xlu1 %1331, %v1222_v0   ;;  %44 = vperm.xlu0 %1330, %v41_v1   ;;  %v95_v3 = vld [vmem:[%s1962_s2] sm:$0xf]  ;;  %v1223_v5 = vld [vmem:[%s1963_s3 + $0x8] sm:$0xff]  ;;  %v1225_v7 = vld [vmem:[%s1963_s3 + $0x18] sm:$0xff] }
   0x3   :  { %v105_v6 = vld [vmem:[%s1963_s3] sm:$0xff]  ;;  %v1224_v8 = vld [vmem:[%s1963_s3 + $0x10] sm:$0xff]  ;;  %v189_v12 = vld [vmem:[%s1965_s5 + $0x8] sm:$0xff] }
   0x4   :  { %v188_v9 = vld [vmem:[%s1965_s5] sm:$0xff]  ;;  %v190_v13 = vld [vmem:[%s1965_s5 + $0x10] sm:$0xff]  ;;  %v1227_v14 = vld [vmem:[%s1965_s5 + $0x48] sm:$0xff] }
   0x5   :  { %v178_v10 = vld [vmem:[%s1964_s4] sm:$0xff] }
   0x6   :  { %98 = vperm.xlu1 %1331, %v95_v3   ;;  %61 = vperm.xlu0 %1330, %v1221_v4   ;;  %v1226_v11 = vld [vmem:[%s1965_s5 + $0x40] sm:$0xff] }
   0xa   :  { %125 = vperm.xlu1 %1331, %v1223_v5   ;;  %108 = vperm.xlu0 %1330, %v105_v6  }
   0xe   :  { %163 = vperm.xlu1 %1331, %v1225_v7   ;;  %144 = vperm.xlu0 %1330, %v1224_v8  }
  0x12   :  { %198 = vperm.xlu1 %1331, %v188_v9   ;;  %181 = vperm.xlu0 %1330, %v178_v10  }
  0x16   :  { %271 = vperm.xlu1 %1331, %v1226_v11   ;;  %203 = vperm.xlu0 %1330, %v189_v12  }
  0x1a   :  { %208 = vperm.xlu1 %1331, %v190_v13   ;;  %276 = vperm.xlu0 %1330, %v1227_v14  }
  0x1b   :  { %14 = vsyncpa [#allocation4], 0  ;;  %v191_v15 = vld [vmem:[%s1965_s5 + $0x18] sm:$0xff]  ;;  %v1228_v16 = vld [vmem:[%s1965_s5 + $0x50] sm:$0xff]  ;;  %v47_v61 = vlaneseq  ;;  %vm948_vm0 = vcmask 523264   ;;  %vm37_vm1 = vcmask 517120  }
  0x1c   :  { %v1234_v17 = vld [vmem:[%s1965_s5 + $0x80] sm:$0xff]  ;;  %v1229_v18 = vld [vmem:[%s1965_s5 + $0x58] sm:$0xff]  ;;  %v1235_v20 = vld [vmem:[%s1965_s5 + $0x88] sm:$0xff]  ;;  %vm1359_vm2 = vmmov 0   ;;  %vm1024_vm3 = vcmask 130112   ;;  %vm1031_vm4 = vcmask 195712  }
  0x1d   :  { %v192_v19 = vld [vmem:[%s1965_s5 + $0x20] sm:$0xff]  ;;  %v1236_v21 = vld [vmem:[%s1965_s5 + $0x90] sm:$0xff]  ;;  %v1231_v23 = vld [vmem:[%s1965_s5 + $0x68] sm:$0xff]  ;;  %v1599_v0 = vshrl.u32 %v47_v61, 7  ;;  %vm1038_vm5 = vcmask 261312   ;;  %vm1045_vm6 = vcmask 326912  }
  0x1e   :  { %213 = vperm.xlu1 %1331, %v191_v15   ;;  %281 = vperm.xlu0 %1330, %v1228_v16   ;;  %v1230_v22 = vld [vmem:[%s1965_s5 + $0x60] sm:$0xff]  ;;  %v193_v24 = vld [vmem:[%s1965_s5 + $0x28] sm:$0xff]  ;;  %v1237_v26 = vld [vmem:[%s1965_s5 + $0x98] sm:$0xff]  ;;  %vm1052_vm7 = vcmask 392512   ;;  %vm1059_vm8 = vcmask 458112   ;;  %vm1066_vm9 = vcmask 523712  }
  0x1f   :  { %v1242_v25 = vld [vmem:[%s1965_s5 + $0xc0] sm:$0xff]  ;;  %v194_v27 = vld [vmem:[%s1965_s5 + $0x30] sm:$0xff]  ;;  %v1243_v28 = vld [vmem:[%s1965_s5 + $0xc8] sm:$0xff]  ;;  %v1608_v3 = vsub.s32 0, %v1599_v0  ;;  %v1611_v4 = vsub.s32 1, %v1599_v0  ;;  %v1623_v8 = vsub.s32 2, %v1599_v0 }
  0x20   :  { %v1238_v29 = vld [vmem:[%s1965_s5 + $0xa0] sm:$0xff]  ;;  %v1232_v30 = vld [vmem:[%s1965_s5 + $0x70] sm:$0xff]  ;;  %v195_v31 = vld [vmem:[%s1965_s5 + $0x38] sm:$0xff]  ;;  %vm1107_vm10 = vcmask 1041409   ;;  %s1361_s13 = smov [#allocation3]  }
  0x21   :  { %v1244_v32 = vld [vmem:[%s1965_s5 + $0xd0] sm:$0xff]  ;;  %v1239_v33 = vld [vmem:[%s1965_s5 + $0xa8] sm:$0xff]  ;;  %v1233_v34 = vld [vmem:[%s1965_s5 + $0x78] sm:$0xff]  ;;  %s1213_s14 = sshll.u32 %s1361_s13, 4  ;;  %s1214_s14 = int_to_ptr.vmem [resolvable:$true] %s1213_s14 }
  0x22   :  { %360 = vperm.xlu1 %1331, %v1234_v17   ;;  %286 = vperm.xlu0 %1330, %v1229_v18   ;;  %v1250_v35 = vld [vmem:[%s1965_s5 + $0x100] sm:$0xff]  ;;  %v1245_v36 = vld [vmem:[%s1965_s5 + $0xd8] sm:$0xff]  ;;  %v1240_v37 = vld [vmem:[%s1965_s5 + $0xb0] sm:$0xff]  ;;  %s1332_s15 = scalar_lea.vmem %s1214_s14, 32  ;;  %p1337_p1 = scmp.lt.s32.totalorder %s1214_s14, %s1214_s14 }
  0x23   :  { %v1251_v38 = vld [vmem:[%s1965_s5 + $0x108] sm:$0xff]  ;;  %v1252_v39 = vld [vmem:[%s1965_s5 + $0x110] sm:$0xff]  ;;  %v1246_v40 = vld [vmem:[%s1965_s5 + $0xe0] sm:$0xff]  ;;  %p1333_p0 = scmp.ne.s32.totalorder %s1214_s14, %s1332_s15  ;;  %p1338_p2 = scmp.lt.s32.totalorder %s1332_s15, %s1332_s15 }
  0x24   :  { %v1247_v41 = vld [vmem:[%s1965_s5 + $0xe8] sm:$0xff]  ;;  %v1241_v42 = vld [vmem:[%s1965_s5 + $0xb8] sm:$0xff]  ;;  %v1258_v43 = vld [vmem:[%s1965_s5 + $0x140] sm:$0xff] }
  0x25   :  { %v1253_v44 = vld [vmem:[%s1965_s5 + $0x118] sm:$0xff]  ;;  %v1248_v45 = vld [vmem:[%s1965_s5 + $0xf0] sm:$0xff]  ;;  %v1259_v46 = vld [vmem:[%s1965_s5 + $0x148] sm:$0xff]  ;;  %p1339_p3 = por %p1338_p2, %p1337_p1 }
  0x26   :  { %218 = vperm.xlu1 %1331, %v192_v19   ;;  %365 = vperm.xlu0 %1330, %v1235_v20   ;;  %v1260_v47 = vld [vmem:[%s1965_s5 + $0x150] sm:$0xff]  ;;  %v1254_v48 = vld [vmem:[%s1965_s5 + $0x120] sm:$0xff]  ;;  %v1255_v49 = vld [vmem:[%s1965_s5 + $0x128] sm:$0xff] }
  0x27   :  { %v1249_v50 = vld [vmem:[%s1965_s5 + $0xf8] sm:$0xff]  ;;  %v1266_v51 = vld [vmem:[%s1965_s5 + $0x180] sm:$0xff]  ;;  %v1256_v53 = vld [vmem:[%s1965_s5 + $0x130] sm:$0xff]  ;;  %p1340_p4 = pnand %p1339_p3, %p1333_p0 }
  0x28   :  { %v1261_v52 = vld [vmem:[%s1965_s5 + $0x158] sm:$0xff]  ;;  %v1267_v54 = vld [vmem:[%s1965_s5 + $0x188] sm:$0xff]  ;;  %v1268_v55 = vld [vmem:[%s1965_s5 + $0x190] sm:$0xff] }
  0x29   :  { %v1262_v56 = vld [vmem:[%s1965_s5 + $0x160] sm:$0xff]  ;;  %v1263_v57 = vld [vmem:[%s1965_s5 + $0x168] sm:$0xff]  ;;  %v1257_v58 = vld [vmem:[%s1965_s5 + $0x138] sm:$0xff] }
  0x2a   :  { %370 = vperm.xlu1 %1331, %v1236_v21   ;;  %291 = vperm.xlu0 %1330, %v1230_v22   ;;  %v1274_v59 = vld [vmem:[%s1965_s5 + $0x1c0] sm:$0xff]  ;;  %v1269_v60 = vld [vmem:[%s1965_s5 + $0x198] sm:$0xff]  ;;  %v1264_v62 = vld [vmem:[%s1965_s5 + $0x170] sm:$0xff] }
  0x2b   :  { %v1275_v63 = vld [vmem:[%s1965_s5 + $0x1c8] sm:$0xff]  ;;  %v1276_v1 = vld [vmem:[%s1965_s5 + $0x1d0] sm:$0xff]  ;;  %v1270_v2 = vld [vmem:[%s1965_s5 + $0x1a0] sm:$0xff] }
  0x2c   :  { %v39_v5 = vld [vmem:[%s1960_s0] sm:$0x7]  ;;  %v40_v6 = vld [vmem:[%s1960_s0 + $0x4] sm:$0x7]  ;;  %v1271_v7 = vld [vmem:[%s1965_s5 + $0x1a8] sm:$0xff] }
  0x2d   :  { %v1265_v9 = vld [vmem:[%s1965_s5 + $0x178] sm:$0xff]  ;;  %v50_v12 = vrot.slane %v39_v5, %v1608_v3  ;;  %v54_v13 = vrot.slane %v40_v6, %v1608_v3  ;;  %v67_v14 = vrot.slane %v39_v5, %v1611_v4  ;;  %v71_v15 = vrot.slane %v40_v6, %v1611_v4  ;;  %v1272_v16 = vld [vmem:[%s1965_s5 + $0x1b0] sm:$0xff] }
  0x2e   :  { %296 = vperm.xlu1 %1331, %v1231_v23   ;;  %223 = vperm.xlu0 %1330, %v193_v24   ;;  %v86_v17 = vrot.slane %v39_v5, %v1623_v8  ;;  %v90_v18 = vrot.slane %v40_v6, %v1623_v8  ;;  %v1277_v19 = vld [vmem:[%s1965_s5 + $0x1d8] sm:$0xff] }
  0x2f   :  { %v1281_v5 = vld [vmem:[%s1965_s5 + $0x1f8] sm:$0xff] }
  0x32   :  { %449 = vperm.xlu1 %1331, %v1242_v25   ;;  %375 = vperm.xlu0 %1330, %v1237_v26   ;;  %v1273_v26 = vld [vmem:[%s1965_s5 + $0x1b8] sm:$0xff] }
  0x36   :  { %228 = vperm.xlu1 %1331, %v194_v27   ;;  %454 = vperm.xlu0 %1330, %v1243_v28  }
  0x3a   :  { %380 = vperm.xlu1 %1331, %v1238_v29   ;;  %301 = vperm.xlu0 %1330, %v1232_v30  }
  0x3e   :  { %233 = vperm.xlu1 %1331, %v195_v31   ;;  %459 = vperm.xlu0 %1330, %v1244_v32   ;;  %v1278_v31 = vld [vmem:[%s1965_s5 + $0x1e0] sm:$0xff] }
  0x42   :  { %385 = vperm.xlu1 %1331, %v1239_v33   ;;  %306 = vperm.xlu0 %1330, %v1233_v34  }
  0x46   :  { %538 = vperm.xlu1 %1331, %v1250_v35   ;;  %464 = vperm.xlu0 %1330, %v1245_v36   ;;  %v883_v36 = vld [vmem:[%s1966_s6] sm:$0xff] }
  0x4a   :  { %390 = vperm.xlu1 %1331, %v1240_v37   ;;  %543 = vperm.xlu0 %1330, %v1251_v38  }
  0x4e   :  { %548 = vperm.xlu1 %1331, %v1252_v39   ;;  %469 = vperm.xlu0 %1330, %v1246_v40   ;;  %v1279_v39 = vld [vmem:[%s1965_s5 + $0x1e8] sm:$0xff]  ;;  %v1653_v40 = vsub.s32 3, %v1599_v0 }
  0x52   :  { %474 = vperm.xlu1 %1331, %v1247_v41   ;;  %395 = vperm.xlu0 %1330, %v1241_v42  }
  0x56   :  { %627 = vperm.xlu1 %1331, %v1258_v43   ;;  %553 = vperm.xlu0 %1330, %v1253_v44  }
  0x5a   :  { %479 = vperm.xlu1 %1331, %v1248_v45   ;;  %632 = vperm.xlu0 %1330, %v1259_v46   ;;  %v1280_v45 = vld [vmem:[%s1965_s5 + $0x1f0] sm:$0xff] }
  0x5e   :  { %637 = vperm.xlu1 %1331, %v1260_v47   ;;  %558 = vperm.xlu0 %1330, %v1254_v48  }
  0x62   :  { %563 = vperm.xlu1 %1331, %v1255_v49   ;;  %484 = vperm.xlu0 %1330, %v1249_v50   ;;  %v884_v50 = vld [vmem:[%s1966_s6 + $0x8] sm:$0xff] }
  0x66   :  { %716 = vperm.xlu1 %1331, %v1266_v51   ;;  %642 = vperm.xlu0 %1330, %v1261_v52  }
  0x6a   :  { %568 = vperm.xlu1 %1331, %v1256_v53   ;;  %721 = vperm.xlu0 %1330, %v1267_v54  }
  0x6e   :  { %726 = vperm.xlu1 %1331, %v1268_v55   ;;  %647 = vperm.xlu0 %1330, %v1262_v56  }
  0x72   :  { %652 = vperm.xlu1 %1331, %v1263_v57   ;;  %573 = vperm.xlu0 %1330, %v1257_v58  }
  0x76   :  { %805 = vperm.xlu1 %1331, %v1274_v59   ;;  %731 = vperm.xlu0 %1330, %v1269_v60  }
  0x7a   :  { %657 = vperm.xlu1 %1331, %v1264_v62   ;;  %810 = vperm.xlu0 %1330, %v1275_v63  }
  0x7e   :  { %815 = vperm.xlu1 %1331, %v1276_v1   ;;  %736 = vperm.xlu0 %1330, %v1270_v2  }
  0x81   :  { %v81_v10 = vpop.permute.xlu1 %80  ;;  %v45_v11 = vpop.permute.xlu0 %44 }
  0x82   :  { %741 = vperm.xlu1 %1331, %v1271_v7   ;;  %662 = vperm.xlu0 %1330, %v1265_v9   ;;  %v55_v22 = vmul.f32 %v50_v12, %v45_v11  ;;  %v56_v23 = vmul.f32 %v54_v13, %v45_v11  ;;  %v91_v27 = vmul.f32 %v86_v17, %v81_v10  ;;  %v885_v9 = vld [vmem:[%s1966_s6 + $0x10] sm:$0xff]  ;;  %v886_v17 = vld [vmem:[%s1966_s6 + $0x18] sm:$0xff] }
  0x83   :  { %v92_v28 = vmul.f32 %v90_v18, %v81_v10 }
  0x85   :  { %v99_v20 = vpop.permute.xlu1 %98  ;;  %v62_v21 = vpop.permute.xlu0 %61 }
  0x86   :  { %v72_v24 = vmul.f32 %v67_v14, %v62_v21  ;;  %v73_v25 = vmul.f32 %v71_v15, %v62_v21  ;;  %746 = vperm.xlu1 %1331, %v1272_v16   ;;  %820 = vperm.xlu0 %1330, %v1277_v19   ;;  %v887_v14 = vld [vmem:[%s1966_s6 + $0x20] sm:$0xff] }
  0x88   :  { %v74_v29 = vadd.f32 %v72_v24, %v55_v22  ;;  %v75_v30 = vadd.f32 %v73_v25, %v56_v23  ;;  %v889_v22 = vld [vmem:[%s1966_s6 + $0x30] sm:$0xff]  ;;  %v888_v25 = vld [vmem:[%s1966_s6 + $0x28] sm:$0xff] }
  0x89   :  { %v126_v32 = vpop.permute.xlu1 %125  ;;  %v109_v33 = vpop.permute.xlu0 %108 }
  0x8a   :  { %v93_v34 = vadd.f32 %v91_v27, %v74_v29  ;;  %v94_v35 = vadd.f32 %v92_v28, %v75_v30  ;;  %751 = vperm.xlu1 %1331, %v1273_v26   ;;  %825 = vperm.xlu0 %1330, %v1278_v31  }
  0x8c   :  { %v101_v37 = vadd.f32 %v99_v20, %v93_v34  ;;  %v102_v38 = vadd.f32 %v99_v20, %v94_v35 }
  0x8d   :  { %v164_v41 = vpop.permute.xlu1 %163  ;;  %v145_v42 = vpop.permute.xlu0 %144 }
  0x8e   :  { %v103_v43 = vmax.f32 %v101_v37, 0.0  ;;  %v104_v44 = vmax.f32 %v102_v38, 0.0  ;;  %893 = vperm.xlu1 %1331, %v883_v36   ;;  %830 = vperm.xlu0 %1330, %v1279_v39  }
  0x90   :  { %v131_v46 = vrot.slane %v103_v43, %v1611_v4  ;;  %v135_v47 = vrot.slane %v104_v44, %v1611_v4  ;;  %v114_v48 = vrot.slane %v103_v43, %v1608_v3  ;;  %v118_v49 = vrot.slane %v104_v44, %v1608_v3 }
  0x91   :  { %v169_v51 = vrot.slane %v103_v43, %v1653_v40  ;;  %v173_v52 = vrot.slane %v104_v44, %v1653_v40  ;;  %v150_v53 = vrot.slane %v103_v43, %v1623_v8  ;;  %v154_v54 = vrot.slane %v104_v44, %v1623_v8  ;;  %v199_v55 = vpop.permute.xlu1 %198  ;;  %v182_v56 = vpop.permute.xlu0 %181 }
  0x92   :  { %v136_v57 = vmul.f32 %v131_v46, %v126_v32  ;;  %v137_v58 = vmul.f32 %v135_v47, %v126_v32  ;;  %v119_v59 = vmul.f32 %v114_v48, %v109_v33  ;;  %v120_v60 = vmul.f32 %v118_v49, %v109_v33  ;;  %835 = vperm.xlu1 %1331, %v1280_v45  }
  0x93   :  { %v174_v62 = vmul.f32 %v169_v51, %v164_v41  ;;  %v175_v63 = vmul.f32 %v173_v52, %v164_v41  ;;  %v155_v1 = vmul.f32 %v150_v53, %v145_v42  ;;  %v156_v2 = vmul.f32 %v154_v54, %v145_v42  ;;  %898 = vperm.xlu0 %1330, %v884_v50  }
  0x94   :  { %v138_v6 = vadd.f32 %v136_v57, %v119_v59  ;;  %v139_v7 = vadd.f32 %v137_v58, %v120_v60 }
  0x95   :  { %v272_v10 = vpop.permute.xlu1 %271  ;;  %v204_v11 = vpop.permute.xlu0 %203 }
  0x96   :  { %v157_v12 = vadd.f32 %v155_v1, %v138_v6  ;;  %v158_v13 = vadd.f32 %v156_v2, %v139_v7  ;;  %840 = vperm.xlu1 %1331, %v1281_v5  }
  0x97   :  { %903 = vperm.xlu0 %1330, %v885_v9  }
  0x98   :  { %v176_v15 = vadd.f32 %v174_v62, %v157_v12  ;;  %v177_v16 = vadd.f32 %v175_v63, %v158_v13 }
  0x99   :  { %v209_v18 = vpop.permute.xlu1 %208  ;;  %v277_v19 = vpop.permute.xlu0 %276 }
  0x9a   :  { %v184_v20 = vadd.f32 %v182_v56, %v176_v15  ;;  %v185_v21 = vadd.f32 %v182_v56, %v177_v16  ;;  %913 = vperm.xlu1 %1331, %v887_v14  }
  0x9b   :  { %908 = vperm.xlu0 %1330, %v886_v17  }
  0x9c   :  { %v1684_v23 = vmax.f32 %v184_v20, 0.0  ;;  %v1686_v24 = vmax.f32 %v185_v21, 0.0 }
  0x9d   :  { %v214_v26 = vpop.permute.xlu1 %213  ;;  %v282_v27 = vpop.permute.xlu0 %281 }
  0x9e   :  { %v1693_v28 = vrot.slane %v1684_v23, %v1608_v3  ;;  %v1697_v29 = vrot.slane %v1686_v24, %v1608_v3  ;;  %v1701_v30 = vrot.slane %v1684_v23, %v1611_v4  ;;  %v1705_v31 = vrot.slane %v1686_v24, %v1611_v4  ;;  %923 = vperm.xlu1 %1331, %v889_v22   ;;  %v890_v4 = vld [vmem:[%s1966_s6 + $0x38] sm:$0xff] }
  0x9f   :  { %918 = vperm.xlu0 %1330, %v888_v25   ;;  %v1709_v32 = vrot.slane %v1684_v23, %v1623_v8  ;;  %v1713_v33 = vrot.slane %v1686_v24, %v1623_v8 }
  0xa0   :  { %v244_v3 = vmul.f32 %v1693_v28, %v199_v55  ;;  %v252_v34 = vmul.f32 %v1697_v29, %v199_v55  ;;  %v317_v35 = vmul.f32 %v1701_v30, %v272_v10  ;;  %v325_v36 = vmul.f32 %v1705_v31, %v272_v10 }
  0xa1   :  { %v245_v37 = vmul.f32 %v1693_v28, %v204_v11  ;;  %v253_v38 = vmul.f32 %v1697_v29, %v204_v11  ;;  %v246_v39 = vmul.f32 %v1693_v28, %v209_v18  ;;  %v254_v8 = vmul.f32 %v1697_v29, %v209_v18  ;;  %v361_v41 = vpop.permute.xlu1 %360  ;;  %v287_v42 = vpop.permute.xlu0 %286 }
  0xa2   :  { %v333_v43 = vadd.f32 %v317_v35, %v244_v3  ;;  %v341_v44 = vadd.f32 %v325_v36, %v252_v34  ;;  %v318_v45 = vmul.f32 %v1701_v30, %v277_v19  ;;  %v326_v46 = vmul.f32 %v1705_v31, %v277_v19 }
  0xa3   :  { %v247_v47 = vmul.f32 %v1693_v28, %v214_v26  ;;  %v255_v48 = vmul.f32 %v1697_v29, %v214_v26  ;;  %v319_v49 = vmul.f32 %v1701_v30, %v282_v27  ;;  %v327_v50 = vmul.f32 %v1705_v31, %v282_v27  ;;  %928 = vperm.xlu0 %1330, %v890_v4  }
  0xa4   :  { %v334_v51 = vadd.f32 %v318_v45, %v245_v37  ;;  %v342_v52 = vadd.f32 %v326_v46, %v253_v38  ;;  %v406_v53 = vmul.f32 %v1709_v32, %v361_v41  ;;  %v414_v54 = vmul.f32 %v1713_v33, %v361_v41 }
  0xa5   :  { %v335_v55 = vadd.f32 %v319_v49, %v246_v39  ;;  %v343_v56 = vadd.f32 %v327_v50, %v254_v8  ;;  %v320_v57 = vmul.f32 %v1701_v30, %v287_v42  ;;  %v328_v58 = vmul.f32 %v1705_v31, %v287_v42  ;;  %v219_v59 = vpop.permute.xlu1 %218  ;;  %v366_v60 = vpop.permute.xlu0 %365 }
  0xa6   :  { %v422_v62 = vadd.f32 %v406_v53, %v333_v43  ;;  %v430_v63 = vadd.f32 %v414_v54, %v341_v44  ;;  %v248_v1 = vmul.f32 %v1693_v28, %v219_v59  ;;  %v256_v2 = vmul.f32 %v1697_v29, %v219_v59 }
  0xa7   :  { %v336_v5 = vadd.f32 %v320_v57, %v247_v47  ;;  %v344_v6 = vadd.f32 %v328_v58, %v255_v48  ;;  %v407_v7 = vmul.f32 %v1709_v32, %v366_v60  ;;  %v415_v9 = vmul.f32 %v1713_v33, %v366_v60 }
  0xa8   :  { %v1750_v4 = vrot.slane %v1684_v23, %v1653_v40  ;;  %v1754_v37 = vrot.slane %v1686_v24, %v1653_v40 }
  0xa9   :  { %v423_v10 = vadd.f32 %v407_v7, %v334_v51  ;;  %v431_v11 = vadd.f32 %v415_v9, %v342_v52  ;;  %v371_v12 = vpop.permute.xlu1 %370  ;;  %v292_v13 = vpop.permute.xlu0 %291 }
  0xaa   :  { %v408_v14 = vmul.f32 %v1709_v32, %v371_v12  ;;  %v416_v15 = vmul.f32 %v1713_v33, %v371_v12  ;;  %v321_v16 = vmul.f32 %v1701_v30, %v292_v13  ;;  %v329_v17 = vmul.f32 %v1705_v31, %v292_v13 }
  0xab   :  { %v578_v12 = vsub.s32 4, %v1599_v0 }
  0xac   :  { %v424_v18 = vadd.f32 %v408_v14, %v335_v55  ;;  %v432_v19 = vadd.f32 %v416_v15, %v343_v56  ;;  %v337_v20 = vadd.f32 %v321_v16, %v248_v1  ;;  %v345_v21 = vadd.f32 %v329_v17, %v256_v2 }
  0xad   :  { %v297_v22 = vpop.permute.xlu1 %296  ;;  %v224_v25 = vpop.permute.xlu0 %223 }
  0xae   :  { %v322_v26 = vmul.f32 %v1701_v30, %v297_v22  ;;  %v330_v27 = vmul.f32 %v1705_v31, %v297_v22  ;;  %v249_v3 = vmul.f32 %v1693_v28, %v224_v25  ;;  %v257_v34 = vmul.f32 %v1697_v29, %v224_v25 }
  0xaf   :  { %v1781_v22 = vrot.slane %v1686_v24, %v578_v12 }
  0xb0   :  { %v338_v35 = vadd.f32 %v322_v26, %v249_v3  ;;  %v346_v36 = vadd.f32 %v330_v27, %v257_v34 }
  0xb1   :  { %v450_v38 = vpop.permute.xlu1 %449  ;;  %v376_v39 = vpop.permute.xlu0 %375 }
  0xb2   :  { %v495_v8 = vmul.f32 %v1750_v4, %v450_v38  ;;  %v503_v41 = vmul.f32 %v1754_v37, %v450_v38  ;;  %v409_v42 = vmul.f32 %v1709_v32, %v376_v39  ;;  %v417_v43 = vmul.f32 %v1713_v33, %v376_v39 }
  0xb4   :  { %v511_v44 = vadd.f32 %v495_v8, %v422_v62  ;;  %v519_v45 = vadd.f32 %v503_v41, %v430_v63  ;;  %v425_v46 = vadd.f32 %v409_v42, %v336_v5  ;;  %v433_v47 = vadd.f32 %v417_v43, %v344_v6 }
  0xb5   :  { %v229_v48 = vpop.permute.xlu1 %228  ;;  %v455_v49 = vpop.permute.xlu0 %454 }
  0xb6   :  { %v250_v50 = vmul.f32 %v1693_v28, %v229_v48  ;;  %v258_v40 = vmul.f32 %v1697_v29, %v229_v48  ;;  %v496_v51 = vmul.f32 %v1750_v4, %v455_v49  ;;  %v504_v52 = vmul.f32 %v1754_v37, %v455_v49 }
  0xb8   :  { %v512_v53 = vadd.f32 %v496_v51, %v423_v10  ;;  %v520_v54 = vadd.f32 %v504_v52, %v431_v11 }
  0xb9   :  { %v381_v55 = vpop.permute.xlu1 %380  ;;  %v302_v56 = vpop.permute.xlu0 %301 }
  0xba   :  { %v410_v57 = vmul.f32 %v1709_v32, %v381_v55  ;;  %v418_v58 = vmul.f32 %v1713_v33, %v381_v55  ;;  %v323_v59 = vmul.f32 %v1701_v30, %v302_v56  ;;  %v331_v60 = vmul.f32 %v1705_v31, %v302_v56 }
  0xbc   :  { %v426_v62 = vadd.f32 %v410_v57, %v337_v20  ;;  %v434_v63 = vadd.f32 %v418_v58, %v345_v21  ;;  %v339_v1 = vadd.f32 %v323_v59, %v250_v50  ;;  %v347_v2 = vadd.f32 %v331_v60, %v258_v40 }
  0xbd   :  { %v234_v5 = vpop.permute.xlu1 %233  ;;  %v460_v6 = vpop.permute.xlu0 %459  ;;  %v667_v58 = vsub.s32 5, %v1599_v0 }
  0xbe   :  { %v251_v7 = vmul.f32 %v1693_v28, %v234_v5  ;;  %v259_v9 = vmul.f32 %v1697_v29, %v234_v5  ;;  %v497_v10 = vmul.f32 %v1750_v4, %v460_v6  ;;  %v505_v11 = vmul.f32 %v1754_v37, %v460_v6 }
  0xbf   :  { %v1778_v29 = vrot.slane %v1684_v23, %v578_v12 }
  0xc0   :  { %v513_v13 = vadd.f32 %v497_v10, %v424_v18  ;;  %v521_v14 = vadd.f32 %v505_v11, %v432_v19  ;;  %v1801_v10 = vrot.slane %v1684_v23, %v667_v58  ;;  %v1804_v11 = vrot.slane %v1686_v24, %v667_v58 }
  0xc1   :  { %v386_v15 = vpop.permute.xlu1 %385  ;;  %v307_v16 = vpop.permute.xlu0 %306 }
  0xc2   :  { %v411_v17 = vmul.f32 %v1709_v32, %v386_v15  ;;  %v419_v20 = vmul.f32 %v1713_v33, %v386_v15  ;;  %v324_v21 = vmul.f32 %v1701_v30, %v307_v16  ;;  %v332_v28 = vmul.f32 %v1705_v31, %v307_v16 }
  0xc4   :  { %v427_v25 = vadd.f32 %v411_v17, %v338_v35  ;;  %v435_v26 = vadd.f32 %v419_v20, %v346_v36  ;;  %v340_v18 = vadd.f32 %v324_v21, %v251_v7  ;;  %v348_v19 = vadd.f32 %v332_v28, %v259_v9 }
  0xc5   :  { %v539_v27 = vpop.permute.xlu1 %538  ;;  %v465_v3 = vpop.permute.xlu0 %464 }
  0xc6   :  { %v584_v34 = vmul.f32 %v1778_v29, %v539_v27  ;;  %v592_v38 = vmul.f32 %v1781_v22, %v539_v27  ;;  %v498_v30 = vmul.f32 %v1750_v4, %v465_v3  ;;  %v506_v31 = vmul.f32 %v1754_v37, %v465_v3 }
  0xc8   :  { %v600_v39 = vadd.f32 %v584_v34, %v511_v44  ;;  %v608_v8 = vadd.f32 %v592_v38, %v519_v45  ;;  %v514_v41 = vadd.f32 %v498_v30, %v425_v46  ;;  %v522_v42 = vadd.f32 %v506_v31, %v433_v47 }
  0xc9   :  { %v391_v43 = vpop.permute.xlu1 %390  ;;  %v544_v48 = vpop.permute.xlu0 %543 }
  0xca   :  { %v412_v35 = vmul.f32 %v1709_v32, %v391_v43  ;;  %v420_v36 = vmul.f32 %v1713_v33, %v391_v43  ;;  %v585_v49 = vmul.f32 %v1778_v29, %v544_v48  ;;  %v593_v50 = vmul.f32 %v1781_v22, %v544_v48 }
  0xcc   :  { %v428_v40 = vadd.f32 %v412_v35, %v339_v1  ;;  %v436_v51 = vadd.f32 %v420_v36, %v347_v2  ;;  %v601_v52 = vadd.f32 %v585_v49, %v512_v53  ;;  %v609_v55 = vadd.f32 %v593_v50, %v520_v54 }
  0xcd   :  { %v549_v56 = vpop.permute.xlu1 %548  ;;  %v470_v57 = vpop.permute.xlu0 %469  ;;  %v756_v36 = vsub.s32 6, %v1599_v0 }
  0xce   :  { %v586_v44 = vmul.f32 %v1778_v29, %v549_v56  ;;  %v594_v45 = vmul.f32 %v1781_v22, %v549_v56  ;;  %v499_v46 = vmul.f32 %v1750_v4, %v470_v57  ;;  %v507_v47 = vmul.f32 %v1754_v37, %v470_v57 }
  0xd0   :  { %v602_v59 = vadd.f32 %v586_v44, %v513_v13  ;;  %v610_v60 = vadd.f32 %v594_v45, %v521_v14  ;;  %v515_v5 = vadd.f32 %v499_v46, %v426_v62  ;;  %v523_v6 = vadd.f32 %v507_v47, %v434_v63 }
  0xd1   :  { %v475_v1 = vpop.permute.xlu1 %474  ;;  %v396_v2 = vpop.permute.xlu0 %395  ;;  %v1824_v46 = vrot.slane %v1684_v23, %v756_v36  ;;  %v1827_v47 = vrot.slane %v1686_v24, %v756_v36 }
  0xd2   :  { %v500_v53 = vmul.f32 %v1750_v4, %v475_v1  ;;  %v508_v54 = vmul.f32 %v1754_v37, %v475_v1  ;;  %v413_v7 = vmul.f32 %v1709_v32, %v396_v2  ;;  %v421_v9 = vmul.f32 %v1713_v33, %v396_v2 }
  0xd4   :  { %v516_v12 = vadd.f32 %v500_v53, %v427_v25  ;;  %v524_v13 = vadd.f32 %v508_v54, %v435_v26  ;;  %v429_v62 = vadd.f32 %v413_v7, %v340_v18  ;;  %v437_v63 = vadd.f32 %v421_v9, %v348_v19 }
  0xd5   :  { %v628_v14 = vpop.permute.xlu1 %627  ;;  %v554_v15 = vpop.permute.xlu0 %553 }
  0xd6   :  { %v673_v16 = vmul.f32 %v1801_v10, %v628_v14  ;;  %v681_v17 = vmul.f32 %v1804_v11, %v628_v14  ;;  %v587_v32 = vmul.f32 %v1778_v29, %v554_v15  ;;  %v595_v33 = vmul.f32 %v1781_v22, %v554_v15 }
  0xd8   :  { %v689_v20 = vadd.f32 %v673_v16, %v600_v39  ;;  %v697_v21 = vadd.f32 %v681_v17, %v608_v8  ;;  %v603_v28 = vadd.f32 %v587_v32, %v514_v41  ;;  %v611_v27 = vadd.f32 %v595_v33, %v522_v42 }
  0xd9   :  { %v480_v3 = vpop.permute.xlu1 %479  ;;  %v633_v34 = vpop.permute.xlu0 %632 }
  0xda   :  { %v501_v25 = vmul.f32 %v1750_v4, %v480_v3  ;;  %v509_v26 = vmul.f32 %v1754_v37, %v480_v3  ;;  %v674_v18 = vmul.f32 %v1801_v10, %v633_v34  ;;  %v682_v19 = vmul.f32 %v1804_v11, %v633_v34 }
  0xdc   :  { %v517_v38 = vadd.f32 %v501_v25, %v428_v40  ;;  %v525_v30 = vadd.f32 %v509_v26, %v436_v51  ;;  %v690_v31 = vadd.f32 %v674_v18, %v601_v52  ;;  %v698_v43 = vadd.f32 %v682_v19, %v609_v55 }
  0xdd   :  { %v638_v48 = vpop.permute.xlu1 %637  ;;  %v559_v35 = vpop.permute.xlu0 %558  ;;  %v845_v26 = vsub.s32 7, %v1599_v0 }
  0xde   :  { %v675_v39 = vmul.f32 %v1801_v10, %v638_v48  ;;  %v683_v8 = vmul.f32 %v1804_v11, %v638_v48  ;;  %v588_v41 = vmul.f32 %v1778_v29, %v559_v35  ;;  %v596_v42 = vmul.f32 %v1781_v22, %v559_v35 }
  0xe0   :  { %v691_v49 = vadd.f32 %v675_v39, %v602_v59  ;;  %v699_v50 = vadd.f32 %v683_v8, %v610_v60  ;;  %v604_v56 = vadd.f32 %v588_v41, %v515_v5  ;;  %v612_v57 = vadd.f32 %v596_v42, %v523_v6 }
  0xe1   :  { %v564_v40 = vpop.permute.xlu1 %563  ;;  %v485_v51 = vpop.permute.xlu0 %484  ;;  %v1847_v41 = vrot.slane %v1684_v23, %v845_v26  ;;  %v1850_v42 = vrot.slane %v1686_v24, %v845_v26 }
  0xe2   :  { %v589_v52 = vmul.f32 %v1778_v29, %v564_v40  ;;  %v597_v55 = vmul.f32 %v1781_v22, %v564_v40  ;;  %v502_v44 = vmul.f32 %v1750_v4, %v485_v51  ;;  %v510_v45 = vmul.f32 %v1754_v37, %v485_v51 }
  0xe4   :  { %v605_v58 = vadd.f32 %v589_v52, %v516_v12  ;;  %v613_v59 = vadd.f32 %v597_v55, %v524_v13  ;;  %v518_v60 = vadd.f32 %v502_v44, %v429_v62  ;;  %v526_v5 = vadd.f32 %v510_v45, %v437_v63 }
  0xe5   :  { %v717_v6 = vpop.permute.xlu1 %716  ;;  %v643_v1 = vpop.permute.xlu0 %642 }
  0xe6   :  { %v762_v2 = vmul.f32 %v1824_v46, %v717_v6  ;;  %v770_v53 = vmul.f32 %v1827_v47, %v717_v6  ;;  %v676_v4 = vmul.f32 %v1801_v10, %v643_v1  ;;  %v684_v37 = vmul.f32 %v1804_v11, %v643_v1 }
  0xe8   :  { %v778_v54 = vadd.f32 %v762_v2, %v689_v20  ;;  %v786_v7 = vadd.f32 %v770_v53, %v697_v21  ;;  %v692_v9 = vadd.f32 %v676_v4, %v603_v28  ;;  %v700_v14 = vadd.f32 %v684_v37, %v611_v27 }
  0xe9   :  { %v569_v15 = vpop.permute.xlu1 %568  ;;  %v722_v16 = vpop.permute.xlu0 %721 }
  0xea   :  { %v590_v12 = vmul.f32 %v1778_v29, %v569_v15  ;;  %v598_v13 = vmul.f32 %v1781_v22, %v569_v15  ;;  %v763_v62 = vmul.f32 %v1824_v46, %v722_v16  ;;  %v771_v63 = vmul.f32 %v1827_v47, %v722_v16 }
  0xec   :  { %v606_v17 = vadd.f32 %v590_v12, %v517_v38  ;;  %v614_v32 = vadd.f32 %v598_v13, %v525_v30  ;;  %v779_v33 = vadd.f32 %v763_v62, %v690_v31  ;;  %v787_v3 = vadd.f32 %v771_v63, %v698_v43 }
  0xed   :  { %v727_v34 = vpop.permute.xlu1 %726  ;;  %v648_v25 = vpop.permute.xlu0 %647 }
  0xee   :  { %v764_v20 = vmul.f32 %v1824_v46, %v727_v34  ;;  %v772_v21 = vmul.f32 %v1827_v47, %v727_v34  ;;  %v677_v28 = vmul.f32 %v1801_v10, %v648_v25  ;;  %v685_v27 = vmul.f32 %v1804_v11, %v648_v25 }
  0xf0   :  { %v780_v18 = vadd.f32 %v764_v20, %v691_v49  ;;  %v788_v19 = vadd.f32 %v772_v21, %v699_v50  ;;  %v693_v48 = vadd.f32 %v677_v28, %v604_v56  ;;  %v701_v35 = vadd.f32 %v685_v27, %v612_v57 }
  0xf1   :  { %v653_v38 = vpop.permute.xlu1 %652  ;;  %v574_v30 = vpop.permute.xlu0 %573 }
  0xf2   :  { %v678_v31 = vmul.f32 %v1801_v10, %v653_v38  ;;  %v686_v43 = vmul.f32 %v1804_v11, %v653_v38  ;;  %v591_v39 = vmul.f32 %v1778_v29, %v574_v30  ;;  %v599_v8 = vmul.f32 %v1781_v22, %v574_v30 }
  0xf4   :  { %v694_v36 = vadd.f32 %v678_v31, %v605_v58  ;;  %v702_v49 = vadd.f32 %v686_v43, %v613_v59  ;;  %v607_v50 = vadd.f32 %v591_v39, %v518_v60  ;;  %v615_v56 = vadd.f32 %v599_v8, %v526_v5 }
  0xf5   :  { %v806_v57 = vpop.permute.xlu1 %805  ;;  %v732_v40 = vpop.permute.xlu0 %731 }
  0xf6   :  { %v851_v51 = vmul.f32 %v1847_v41, %v806_v57  ;;  %v859_v52 = vmul.f32 %v1850_v42, %v806_v57  ;;  %v765_v29 = vmul.f32 %v1824_v46, %v732_v40  ;;  %v773_v22 = vmul.f32 %v1827_v47, %v732_v40 }
  0xf8   :  { %v781_v55 = vadd.f32 %v765_v29, %v692_v9  ;;  %v789_v23 = vadd.f32 %v773_v22, %v700_v14  ;;  %v867_v44 = vadd.f32 %v851_v51, %v778_v54  ;;  %v1856_v45 = vadd.f32 %v859_v52, %v786_v7 }
  0xf9   :  { %v658_v24 = vpop.permute.xlu1 %657  ;;  %v811_v58 = vpop.permute.xlu0 %810 }
  0xfa   :  { %v679_v59 = vmul.f32 %v1801_v10, %v658_v24  ;;  %v687_v60 = vmul.f32 %v1804_v11, %v658_v24  ;;  %v852_v5 = vmul.f32 %v1847_v41, %v811_v58  ;;  %v860_v6 = vmul.f32 %v1850_v42, %v811_v58 }
  0xfc   :  { %v695_v1 = vadd.f32 %v679_v59, %v606_v17  ;;  %v703_v2 = vadd.f32 %v687_v60, %v614_v32  ;;  %v868_v53 = vadd.f32 %v852_v5, %v779_v33  ;;  %v876_v4 = vadd.f32 %v860_v6, %v787_v3 }
  0xfd   :  { %v816_v37 = vpop.permute.xlu1 %815  ;;  %v737_v9 = vpop.permute.xlu0 %736 }
  0xfe   :  { %v853_v54 = vmul.f32 %v1847_v41, %v816_v37  ;;  %v861_v7 = vmul.f32 %v1850_v42, %v816_v37  ;;  %v766_v14 = vmul.f32 %v1824_v46, %v737_v9  ;;  %v774_v15 = vmul.f32 %v1827_v47, %v737_v9 }
 0x100   :  { %v782_v16 = vadd.f32 %v766_v14, %v693_v48  ;;  %v790_v12 = vadd.f32 %v774_v15, %v701_v35  ;;  %v869_v13 = vadd.f32 %v853_v54, %v780_v18  ;;  %v877_v62 = vadd.f32 %v861_v7, %v788_v19 }
 0x101   :  { %v742_v63 = vpop.permute.xlu1 %741  ;;  %v663_v33 = vpop.permute.xlu0 %662 }
 0x102   :  { %v767_v17 = vmul.f32 %v1824_v46, %v742_v63  ;;  %v775_v32 = vmul.f32 %v1827_v47, %v742_v63  ;;  %v680_v3 = vmul.f32 %v1801_v10, %v663_v33  ;;  %v688_v34 = vmul.f32 %v1804_v11, %v663_v33 }
 0x104   :  { %v783_v25 = vadd.f32 %v767_v17, %v694_v36  ;;  %v791_v20 = vadd.f32 %v775_v32, %v702_v49  ;;  %v696_v21 = vadd.f32 %v680_v3, %v607_v50  ;;  %v704_v28 = vadd.f32 %v688_v34, %v615_v56 }
 0x105   :  { %v747_v27 = vpop.permute.xlu1 %746  ;;  %v821_v19 = vpop.permute.xlu0 %820 }
 0x106   :  { %v768_v26 = vmul.f32 %v1824_v46, %v747_v27  ;;  %v776_v18 = vmul.f32 %v1827_v47, %v747_v27  ;;  %v854_v48 = vmul.f32 %v1847_v41, %v821_v19  ;;  %v862_v35 = vmul.f32 %v1850_v42, %v821_v19 }
 0x108   :  { %v784_v38 = vadd.f32 %v768_v26, %v695_v1  ;;  %v792_v30 = vadd.f32 %v776_v18, %v703_v2  ;;  %v870_v10 = vadd.f32 %v854_v48, %v781_v55  ;;  %v878_v43 = vadd.f32 %v862_v35, %v789_v23 }
 0x109   :  { %v752_v31 = vpop.permute.xlu1 %751  ;;  %v826_v8 = vpop.permute.xlu0 %825 }
 0x10a   :  { %v769_v11 = vmul.f32 %v1824_v46, %v752_v31  ;;  %v777_v39 = vmul.f32 %v1827_v47, %v752_v31  ;;  %v855_v36 = vmul.f32 %v1847_v41, %v826_v8  ;;  %v863_v49 = vmul.f32 %v1850_v42, %v826_v8  ;;  %v1117_v8 = vld [vmem:[%s1967_s7] sm:$0xff] }
 0x10c   :  { %v785_v50 = vadd.f32 %v769_v11, %v696_v21  ;;  %v793_v56 = vadd.f32 %v777_v39, %v704_v28  ;;  %v871_v40 = vadd.f32 %v855_v36, %v782_v16  ;;  %v879_v51 = vadd.f32 %v863_v49, %v790_v12  ;;  %v1118_v36 = vld [vmem:[%s1967_s7 + $0x8] sm:$0xff] }
 0x10d   :  { %v894_v57 = vpop.permute.xlu1 %893  ;;  %v831_v29 = vpop.permute.xlu0 %830  ;;  %v1357_v49 = vmov 0.0|0.0  }
 0x10e   :  { %v931_v52 = vadd.f32 %v894_v57, %v867_v44  ;;  %v856_v22 = vmul.f32 %v1847_v41, %v831_v29  ;;  %v864_v55 = vmul.f32 %v1850_v42, %v831_v29  ;;  %v939_v2 = vadd.f32 %v894_v57, %v1856_v45  ;;  %1312 = vmatprep.subr.bf16.mxu0 %v1357_v49  ;;  %v1119_v57 = vld [vmem:[%s1967_s7 + $0x10] sm:$0xff]  ;;  %v1122_v29 = vld [vmem:[%s1967_s7 + $0x28] sm:$0xff] }
 0x110   :  { %v949_v46 = vsel %vm948_vm0, %v931_v52, -inf  ;;  %v872_v23 = vadd.f32 %v856_v22, %v783_v25  ;;  %v880_v24 = vadd.f32 %v864_v55, %v791_v20  ;;  %v973_v63 = vsel %vm948_vm0, %v939_v2, -inf }
 0x111   :  { %v836_v47 = vpop.permute.xlu1 %835  ;;  %950 = vmax.xlane.f32.xlu1 %v949_v46  ;;  %v1360_v22 = vmov 0.0   ;;  %v1123_v46 = vld [vmem:[%s1967_s7 + $0x30] sm:$0xff] }
 0x112   :  { %v857_v58 = vmul.f32 %v1847_v41, %v836_v47  ;;  %v865_v59 = vmul.f32 %v1850_v42, %v836_v47  ;;  %v899_v60 = vpop.permute.xlu0 %898  ;;  %1309 = vmatprep.mubr.msk.f32.mxu0 %vm1359_vm2, %v1360_v22  ;;  %v1124_v47 = vld [vmem:[%s1967_s7 + $0x38] sm:$0xff] }
 0x113   :  { %v932_v5 = vadd.f32 %v899_v60, %v868_v53  ;;  %v940_v6 = vadd.f32 %v899_v60, %v876_v4 }
 0x114   :  { %v873_v1 = vadd.f32 %v857_v58, %v784_v38  ;;  %v881_v44 = vadd.f32 %v865_v59, %v792_v30 }
 0x115   :  { %v841_v37 = vpop.permute.xlu1 %840  ;;  %v952_v9 = vsel %vm948_vm0, %v932_v5, -inf  ;;  %v976_v54 = vsel %vm948_vm0, %v940_v6, -inf }
 0x116   :  { %v858_v7 = vmul.f32 %v1847_v41, %v841_v37  ;;  %v866_v14 = vmul.f32 %v1850_v42, %v841_v37  ;;  %v904_v15 = vpop.permute.xlu0 %903  ;;  %953 = vmax.xlane.f32.xlu0 %v952_v9  ;;  %977 = vmax.xlane.f32.xlu1 %v976_v54 }
 0x117   :  { %v941_v16 = vadd.f32 %v904_v15, %v877_v62  ;;  %v933_v4 = vadd.f32 %v904_v15, %v869_v13 }
 0x118   :  { %v874_v12 = vadd.f32 %v858_v7, %v785_v50  ;;  %v882_v53 = vadd.f32 %v866_v14, %v793_v56  ;;  %v1313_v50 = vpack.c.bf16 %v1118_v36, %v1117_v8  ;;  %v1358_v56 = vmov -inf  }
 0x119   :  { %v979_v45 = vsel %vm948_vm0, %v941_v16, -inf  ;;  %v914_v17 = vpop.permute.xlu1 %913  ;;  %v955_v42 = vsel %vm948_vm0, %v933_v4, -inf  ;;  %38 = vst.msk [vmem:[#allocation2] sm:$0x3] %vm37_vm1, %v1358_v56 }
 0x11a   :  { %v909_v32 = vpop.permute.xlu0 %908  ;;  %974 = vmax.xlane.f32.xlu0 %v973_v63  ;;  %980 = vmax.xlane.f32.xlu1 %v979_v45  ;;  %v943_v3 = vadd.f32 %v914_v17, %v879_v51  ;;  %v935_v62 = vadd.f32 %v914_v17, %v871_v40  ;;  %v1120_v40 = vld [vmem:[%s1967_s7 + $0x18] sm:$0xff]  ;;  %v1121_v51 = vld [vmem:[%s1967_s7 + $0x20] sm:$0xff] }
 0x11b   :  { %v942_v33 = vadd.f32 %v909_v32, %v878_v43  ;;  %v934_v41 = vadd.f32 %v909_v32, %v870_v10  ;;  %1314 = vmatpush3.bf16.msra.mxu0 %v1313_v50  ;;  %v1316_v52 = vpack.c.bf16 %v1120_v40, %v1119_v57  ;;  %v1319_v55 = vpack.c.bf16 %v1122_v29, %v1121_v51 }
 0x11c   :  { %v985_v21 = vsel %vm948_vm0, %v943_v3, -inf  ;;  %v961_v18 = vsel %vm948_vm0, %v935_v62, -inf  ;;  %1315 = vmatprep.subr.bf16.mxu0 %v1357_v49 }
 0x11d   :  { %v982_v34 = vsel %vm948_vm0, %v942_v33, -inf  ;;  %v958_v20 = vsel %vm948_vm0, %v934_v41, -inf  ;;  %v924_v28 = vpop.permute.xlu1 %923 }
 0x11e   :  { %v919_v25 = vpop.permute.xlu0 %918  ;;  %956 = vmax.xlane.f32.xlu0 %v955_v42  ;;  %983 = vmax.xlane.f32.xlu1 %v982_v34  ;;  %v945_v27 = vadd.f32 %v924_v28, %v881_v44  ;;  %v937_v35 = vadd.f32 %v924_v28, %v873_v1  ;;  %v1014_v44 = vand.u32 127, %v47_v61 }
 0x11f   :  { %v944_v13 = vadd.f32 %v919_v25, %v880_v24  ;;  %v936_v26 = vadd.f32 %v919_v25, %v872_v23  ;;  %1317 = vmatpush3.bf16.msra.mxu0 %v1316_v52  ;;  %v1322_v23 = vpack.c.bf16 %v1124_v47, %v1123_v46 }
 0x120   :  { %v991_v31 = vsel %vm948_vm0, %v945_v27, -inf  ;;  %v967_v43 = vsel %vm948_vm0, %v937_v35, -inf  ;;  %1318 = vmatprep.subr.bf16.mxu0 %v1357_v49  ;;  %v1019_v9 = vadd.s32 4294967288, %v1014_v44  ;;  %v1026_v54 = vadd.s32 4294967280, %v1014_v44 }
 0x121   :  { %v988_v19 = vsel %vm948_vm0, %v944_v13, -inf  ;;  %v964_v30 = vsel %vm948_vm0, %v936_v26, -inf  ;;  %v1033_v7 = vadd.s32 4294967272, %v1014_v44  ;;  %v1040_v14 = vadd.s32 4294967264, %v1014_v44 }
 0x122   :  { %959 = vmax.xlane.f32.xlu0 %v958_v20  ;;  %986 = vmax.xlane.f32.xlu1 %v985_v21  ;;  %v929_v48 = vpop.permute.xlu0 %928  ;;  %v1047_v4 = vadd.s32 4294967256, %v1014_v44  ;;  %v1029_v63 = vsub.s32 %v1026_v54, %v1599_v0  ;;  %v1054_v45 = vadd.s32 4294967248, %v1014_v44  ;;  %v1061_v17 = vadd.s32 4294967240, %v1014_v44 }
 0x123   :  { %v946_v38 = vadd.f32 %v929_v48, %v882_v53  ;;  %v938_v10 = vadd.f32 %v929_v48, %v874_v12  ;;  %1320 = vmatpush3.bf16.msra.mxu0 %v1319_v55  ;;  %v1017_v12 = vsub.s32 %v1014_v44, %v1599_v0  ;;  %v1022_v53 = vsub.s32 %v1019_v9, %v1599_v0  ;;  %v947_v55 = vld [vmem:[#allocation2] sm:$0x3] }
 0x124   :  { %1321 = vmatprep.subr.bf16.mxu0 %v1357_v49  ;;  %v1036_v61 = vsub.s32 %v1033_v7, %v1599_v0  ;;  %v1043_v33 = vsub.s32 %v1040_v14, %v1599_v0  ;;  %v1050_v25 = vsub.s32 %v1047_v4, %v1599_v0  ;;  %v1057_v20 = vsub.s32 %v1054_v45, %v1599_v0 }
 0x125   :  { %v994_v11 = vsel %vm948_vm0, %v946_v38, -inf  ;;  %v970_v39 = vsel %vm948_vm0, %v938_v10, -inf  ;;  %v1064_v21 = vsub.s32 %v1061_v17, %v1599_v0 }
 0x126   :  { %962 = vmax.xlane.f32.xlu0 %v961_v18  ;;  %989 = vmax.xlane.f32.xlu1 %v988_v19 }
 0x127   :  { %1323 = vmatpush3.bf16.msra.mxu0 %v1322_v23 }
 0x12a   :  { %965 = vmax.xlane.f32.xlu0 %v964_v30  ;;  %992 = vmax.xlane.f32.xlu1 %v991_v31 }
 0x12e   :  { %968 = vmax.xlane.f32.xlu0 %v967_v43  ;;  %995 = vmax.xlane.f32.xlu1 %v994_v11 }
 0x132   :  { %971 = vmax.xlane.f32.xlu0 %v970_v39 }
 0x19e   :  { %v951_v24 = vpop.xlane.xlu1 %950 }
 0x19f   :  { %v1018_v28 = vrot.slane %v951_v24, %v1017_v12 }
 0x1a3   :  { %v954_v58 = vpop.xlane.xlu0 %953  ;;  %v978_v59 = vpop.xlane.xlu1 %977 }
 0x1a4   :  { %v1023_v42 = vrot.slane %v954_v58, %v1022_v53  ;;  %v1075_v34 = vrot.slane %v978_v59, %v1022_v53  ;;  %v1282_v59 = vld [vmem:[%s1968_s8] ss:$0 sm:$0xff] }
 0x1a6   :  { %v1025_v30 = vsel %vm1024_vm3, %v1023_v42, %v1018_v28 }
 0x1a7   :  { %v975_v60 = vpop.xlane.xlu0 %974  ;;  %v981_v5 = vpop.xlane.xlu1 %980 }
 0x1a8   :  { %v1071_v32 = vrot.slane %v975_v60, %v1017_v12  ;;  %v1080_v62 = vrot.slane %v981_v5, %v1029_v63 }
 0x1aa   :  { %v1076_v27 = vsel %vm1024_vm3, %v1075_v34, %v1071_v32 }
 0x1ab   :  { %v957_v6 = vpop.xlane.xlu0 %956  ;;  %v984_v1 = vpop.xlane.xlu1 %983  ;;  %v1081_v43 = vsel %vm1031_vm4, %v1080_v62, %v1076_v27 }
 0x1ac   :  { %v1030_v13 = vrot.slane %v957_v6, %v1029_v63  ;;  %v1085_v26 = vrot.slane %v984_v1, %v1036_v61 }
 0x1ae   :  { %v1032_v0 = vsel %vm1031_vm4, %v1030_v13, %v1025_v30  ;;  %v1086_v8 = vsel %vm1038_vm5, %v1085_v26, %v1081_v43 }
 0x1af   :  { %v960_v2 = vpop.xlane.xlu0 %959  ;;  %v987_v37 = vpop.xlane.xlu1 %986 }
 0x1b0   :  { %v1037_v18 = vrot.slane %v960_v2, %v1036_v61  ;;  %v1090_v19 = vrot.slane %v987_v37, %v1043_v33 }
 0x1b2   :  { %v1039_v36 = vsel %vm1038_vm5, %v1037_v18, %v1032_v0  ;;  %v1091_v50 = vsel %vm1045_vm6, %v1090_v19, %v1086_v8 }
 0x1b3   :  { %v963_v15 = vpop.xlane.xlu0 %962  ;;  %v990_v16 = vpop.xlane.xlu1 %989 }
 0x1b4   :  { %v1044_v48 = vrot.slane %v963_v15, %v1043_v33  ;;  %v1095_v31 = vrot.slane %v990_v16, %v1050_v25 }
 0x1b6   :  { %v1046_v56 = vsel %vm1045_vm6, %v1044_v48, %v1039_v36  ;;  %v1096_v40 = vsel %vm1052_vm7, %v1095_v31, %v1091_v50 }
 0x1b7   :  { %v966_v3 = vpop.xlane.xlu0 %965  ;;  %v993_v41 = vpop.xlane.xlu1 %992 }
 0x1b8   :  { %v1051_v10 = vrot.slane %v966_v3, %v1050_v25  ;;  %v1100_v11 = vrot.slane %v993_v41, %v1057_v20 }
 0x1ba   :  { %v1053_v51 = vsel %vm1052_vm7, %v1051_v10, %v1046_v56  ;;  %v1101_v29 = vsel %vm1059_vm8, %v1100_v11, %v1096_v40 }
 0x1bb   :  { %v969_v35 = vpop.xlane.xlu0 %968  ;;  %v996_v38 = vpop.xlane.xlu1 %995 }
 0x1bc   :  { %v1058_v39 = vrot.slane %v969_v35, %v1057_v20  ;;  %v1105_v49 = vrot.slane %v996_v38, %v1064_v21 }
 0x1be   :  { %v1060_v22 = vsel %vm1059_vm8, %v1058_v39, %v1053_v51  ;;  %v1106_v46 = vsel %vm1066_vm9, %v1105_v49, %v1101_v29 }
 0x1bf   :  { %v972_v57 = vpop.xlane.xlu0 %971 }
 0x1c0   :  { %v1065_v52 = vrot.slane %v972_v57, %v1064_v21 }
 0x1c2   :  { %v1067_v47 = vsel %vm1066_vm9, %v1065_v52, %v1060_v22 }
 0x1c3   :  { %v1108_v23 = vsel %vm1107_vm10, %v1106_v46, %v1067_v47 }
 0x1c4   :  { %v1110_v24 = vmax.f32 %v947_v55, %v1108_v23 }
 0x1c6   :  { %1112 = vst.msk [vmem:[#allocation2] sm:$0x3] %vm37_vm1, %v1110_v24 }
 0x1cd   :  { %v1116_v58 = vld [vmem:[#allocation2] sm:$0x3] }
 0x1ce   :  { %1310 = vmatmul.mubr.msk.f32.vlgmr.msra.gmra.mrb[0].mxu0 %vm948_vm0, %v1116_v58 }
 0x2a1   :  { %v1201_v60 = vpop.f32.mrb[0].mxu0 }
 0x2a2   :  { %v1202_v5 = vadd.f32 %v1282_v59, %v1201_v60  ;;  %v1311_v6 = vpop.f32.mrb[1].mxu0 }
 0x2a4   :  { %v1205_v1 = vmax.f32 %v1202_v5, 0.0 }
 0x2a6   :  { %1206 = vst [vmem:[#allocation3] sm:$0x3] %v1205_v1 }
 0x2a7   :  { %1343 = shalt.err (!%p1340_p4)
}
 0x2a8   :  { %s1344_s17 = scalar_lea.hbm %s1969_s9, 32 }
 0x2a9   :  { %p1345_p5 = scmp.ne.s32.totalorder %s1969_s9, %s1344_s17  ;;  %p1348_p6 = scmp.lt.u32.totalorder %s1344_s17, %s1969_s9 }
 0x2ab   :  { %p1350_p7 = pnand %p1348_p6, %p1345_p5 }
 0x2ad   :  { %1353 = shalt.err (!%p1350_p7)
}
 0x2ae   :  { %1216 = dma.vmem_to_hbm [thread:$0]  %s1214_s14, 32, %s1969_s9, [#allocation4]  }
 0x2af   :  { %1354 = dma.done.wait [#allocation4], 32  }
 0x2b0   :  { %1355 = vsyncadd [#allocation4], 4294967264 }
 0x2b1   :  { %1220 = vsyncpa [#allocation4], 1 }

// kernel: tpu_custom_call.1
= control target key start
LH: loop header
LB: loop body
LE: loop exit
PB: predicated region body
PF: predicated region fallthrough
CT: control target
= control target key end

     0   :  { %v1356_v2 = vmov 0   ;;  %s1960_s0 = inlined_call_operand.vmem [shape: f32[2,3,64], index: 0, kind: input, shape index: {}]   ;;  %s1961_s1 = inlined_call_operand.vmem [shape: f32[3,4,1], index: 1, kind: input, shape index: {}]   ;;  %s1962_s2 = inlined_call_operand.vmem [shape: f32[4,1], index: 2, kind: input, shape index: {}]   ;;  %s1963_s3 = inlined_call_operand.vmem [shape: f32[4,8,1], index: 3, kind: input, shape index: {}]   ;;  %s1964_s4 = inlined_call_operand.vmem [shape: f32[8,1], index: 4, kind: input, shape index: {}]   ;;  %s1965_s5 = inlined_call_operand.vmem [shape: f32[8,64,1], index: 5, kind: input, shape index: {}]   ;;  %s1966_s6 = inlined_call_operand.vmem [shape: f32[64,1], index: 6, kind: input, shape index: {}]   ;;  %s1967_s7 = inlined_call_operand.vmem [shape: f32[64,128], index: 7, kind: input, shape index: {}]   ;;  %s1968_s8 = inlined_call_operand.vmem [shape: f32[1,128], index: 8, kind: input, shape index: {}]   ;;  %s1969_s9 = inlined_call_operand.hbm [shape: f32[2,128], index: 9, kind: output, shape index: {}]  }
   0x1   :  { %v1222_v0 = vld [vmem:[%s1961_s1 + $0x8] sm:$0xf]  ;;  %v41_v1 = vld [vmem:[%s1961_s1] sm:$0xf]  ;;  %1331 = vset.pattern.permute.xlu1 %v1356_v2  ;;  %1330 = vset.pattern.permute.xlu0 %v1356_v2  ;;  %v1221_v4 = vld [vmem:[%s1961_s1 + $0x4] sm:$0xf] }
   0x2   :  { %80 = vperm.xlu1 %1331, %v1222_v0   ;;  %44 = vperm.xlu0 %1330, %v41_v1   ;;  %v95_v3 = vld [vmem:[%s1962_s2] sm:$0xf]  ;;  %v1223_v5 = vld [vmem:[%s1963_s3 + $0x8] sm:$0xff]  ;;  %v1225_v7 = vld [vmem:[%s1963_s3 + $0x18] sm:$0xff] }
   0x3   :  { %v105_v6 = vld [vmem:[%s1963_s3] sm:$0xff]  ;;  %v1224_v8 = vld [vmem:[%s1963_s3 + $0x10] sm:$0xff]  ;;  %v189_v12 = vld [vmem:[%s1965_s5 + $0x8] sm:$0xff] }
   0x4   :  { %v188_v9 = vld [vmem:[%s1965_s5] sm:$0xff]  ;;  %v190_v13 = vld [vmem:[%s1965_s5 + $0x10] sm:$0xff]  ;;  %v1227_v14 = vld [vmem:[%s1965_s5 + $0x48] sm:$0xff] }
   0x5   :  { %v178_v10 = vld [vmem:[%s1964_s4] sm:$0xff] }
   0x6   :  { %98 = vperm.xlu1 %1331, %v95_v3   ;;  %61 = vperm.xlu0 %1330, %v1221_v4   ;;  %v1226_v11 = vld [vmem:[%s1965_s5 + $0x40] sm:$0xff] }
   0xa   :  { %125 = vperm.xlu1 %1331, %v1223_v5   ;;  %108 = vperm.xlu0 %1330, %v105_v6  }
   0xe   :  { %163 = vperm.xlu1 %1331, %v1225_v7   ;;  %144 = vperm.xlu0 %1330, %v1224_v8  }
  0x12   :  { %198 = vperm.xlu1 %1331, %v188_v9   ;;  %181 = vperm.xlu0 %1330, %v178_v10  }
  0x16   :  { %271 = vperm.xlu1 %1331, %v1226_v11   ;;  %203 = vperm.xlu0 %1330, %v189_v12  }
  0x1a   :  { %208 = vperm.xlu1 %1331, %v190_v13   ;;  %276 = vperm.xlu0 %1330, %v1227_v14  }
  0x1b   :  { %14 = vsyncpa [#allocation4], 0  ;;  %v191_v15 = vld [vmem:[%s1965_s5 + $0x18] sm:$0xff]  ;;  %v1228_v16 = vld [vmem:[%s1965_s5 + $0x50] sm:$0xff]  ;;  %v47_v61 = vlaneseq  ;;  %vm948_vm0 = vcmask 523264   ;;  %vm37_vm1 = vcmask 517120  }
  0x1c   :  { %v1234_v17 = vld [vmem:[%s1965_s5 + $0x80] sm:$0xff]  ;;  %v1229_v18 = vld [vmem:[%s1965_s5 + $0x58] sm:$0xff]  ;;  %v1235_v20 = vld [vmem:[%s1965_s5 + $0x88] sm:$0xff]  ;;  %vm1359_vm2 = vmmov 0   ;;  %vm1024_vm3 = vcmask 130112   ;;  %vm1031_vm4 = vcmask 195712  }
  0x1d   :  { %v192_v19 = vld [vmem:[%s1965_s5 + $0x20] sm:$0xff]  ;;  %v1236_v21 = vld [vmem:[%s1965_s5 + $0x90] sm:$0xff]  ;;  %v1231_v23 = vld [vmem:[%s1965_s5 + $0x68] sm:$0xff]  ;;  %v1599_v0 = vshrl.u32 %v47_v61, 7  ;;  %vm1038_vm5 = vcmask 261312   ;;  %vm1045_vm6 = vcmask 326912  }
  0x1e   :  { %213 = vperm.xlu1 %1331, %v191_v15   ;;  %281 = vperm.xlu0 %1330, %v1228_v16   ;;  %v1230_v22 = vld [vmem:[%s1965_s5 + $0x60] sm:$0xff]  ;;  %v193_v24 = vld [vmem:[%s1965_s5 + $0x28] sm:$0xff]  ;;  %v1237_v26 = vld [vmem:[%s1965_s5 + $0x98] sm:$0xff]  ;;  %vm1052_vm7 = vcmask 392512   ;;  %vm1059_vm8 = vcmask 458112   ;;  %vm1066_vm9 = vcmask 523712  }
  0x1f   :  { %v1242_v25 = vld [vmem:[%s1965_s5 + $0xc0] sm:$0xff]  ;;  %v194_v27 = vld [vmem:[%s1965_s5 + $0x30] sm:$0xff]  ;;  %v1243_v28 = vld [vmem:[%s1965_s5 + $0xc8] sm:$0xff]  ;;  %v1608_v3 = vsub.s32 0, %v1599_v0  ;;  %v1611_v4 = vsub.s32 1, %v1599_v0  ;;  %v1623_v8 = vsub.s32 2, %v1599_v0 }
  0x20   :  { %v1238_v29 = vld [vmem:[%s1965_s5 + $0xa0] sm:$0xff]  ;;  %v1232_v30 = vld [vmem:[%s1965_s5 + $0x70] sm:$0xff]  ;;  %v195_v31 = vld [vmem:[%s1965_s5 + $0x38] sm:$0xff]  ;;  %vm1107_vm10 = vcmask 1041409   ;;  %s1361_s13 = smov [#allocation3]  }
  0x21   :  { %v1244_v32 = vld [vmem:[%s1965_s5 + $0xd0] sm:$0xff]  ;;  %v1239_v33 = vld [vmem:[%s1965_s5 + $0xa8] sm:$0xff]  ;;  %v1233_v34 = vld [vmem:[%s1965_s5 + $0x78] sm:$0xff]  ;;  %s1213_s14 = sshll.u32 %s1361_s13, 4  ;;  %s1214_s14 = int_to_ptr.vmem [resolvable:$true] %s1213_s14 }
  0x22   :  { %360 = vperm.xlu1 %1331, %v1234_v17   ;;  %286 = vperm.xlu0 %1330, %v1229_v18   ;;  %v1250_v35 = vld [vmem:[%s1965_s5 + $0x100] sm:$0xff]  ;;  %v1245_v36 = vld [vmem:[%s1965_s5 + $0xd8] sm:$0xff]  ;;  %v1240_v37 = vld [vmem:[%s1965_s5 + $0xb0] sm:$0xff]  ;;  %s1332_s15 = scalar_lea.vmem %s1214_s14, 32  ;;  %p1337_p1 = scmp.lt.s32.totalorder %s1214_s14, %s1214_s14 }
  0x23   :  { %v1251_v38 = vld [vmem:[%s1965_s5 + $0x108] sm:$0xff]  ;;  %v1252_v39 = vld [vmem:[%s1965_s5 + $0x110] sm:$0xff]  ;;  %v1246_v40 = vld [vmem:[%s1965_s5 + $0xe0] sm:$0xff]  ;;  %p1333_p0 = scmp.ne.s32.totalorder %s1214_s14, %s1332_s15  ;;  %p1338_p2 = scmp.lt.s32.totalorder %s1332_s15, %s1332_s15 }
  0x24   :  { %v1247_v41 = vld [vmem:[%s1965_s5 + $0xe8] sm:$0xff]  ;;  %v1241_v42 = vld [vmem:[%s1965_s5 + $0xb8] sm:$0xff]  ;;  %v1258_v43 = vld [vmem:[%s1965_s5 + $0x140] sm:$0xff] }
  0x25   :  { %v1253_v44 = vld [vmem:[%s1965_s5 + $0x118] sm:$0xff]  ;;  %v1248_v45 = vld [vmem:[%s1965_s5 + $0xf0] sm:$0xff]  ;;  %v1259_v46 = vld [vmem:[%s1965_s5 + $0x148] sm:$0xff]  ;;  %p1339_p3 = por %p1338_p2, %p1337_p1 }
  0x26   :  { %218 = vperm.xlu1 %1331, %v192_v19   ;;  %365 = vperm.xlu0 %1330, %v1235_v20   ;;  %v1260_v47 = vld [vmem:[%s1965_s5 + $0x150] sm:$0xff]  ;;  %v1254_v48 = vld [vmem:[%s1965_s5 + $0x120] sm:$0xff]  ;;  %v1255_v49 = vld [vmem:[%s1965_s5 + $0x128] sm:$0xff] }
  0x27   :  { %v1249_v50 = vld [vmem:[%s1965_s5 + $0xf8] sm:$0xff]  ;;  %v1266_v51 = vld [vmem:[%s1965_s5 + $0x180] sm:$0xff]  ;;  %v1256_v53 = vld [vmem:[%s1965_s5 + $0x130] sm:$0xff]  ;;  %p1340_p4 = pnand %p1339_p3, %p1333_p0 }
  0x28   :  { %v1261_v52 = vld [vmem:[%s1965_s5 + $0x158] sm:$0xff]  ;;  %v1267_v54 = vld [vmem:[%s1965_s5 + $0x188] sm:$0xff]  ;;  %v1268_v55 = vld [vmem:[%s1965_s5 + $0x190] sm:$0xff] }
  0x29   :  { %v1262_v56 = vld [vmem:[%s1965_s5 + $0x160] sm:$0xff]  ;;  %v1263_v57 = vld [vmem:[%s1965_s5 + $0x168] sm:$0xff]  ;;  %v1257_v58 = vld [vmem:[%s1965_s5 + $0x138] sm:$0xff] }
  0x2a   :  { %370 = vperm.xlu1 %1331, %v1236_v21   ;;  %291 = vperm.xlu0 %1330, %v1230_v22   ;;  %v1274_v59 = vld [vmem:[%s1965_s5 + $0x1c0] sm:$0xff]  ;;  %v1269_v60 = vld [vmem:[%s1965_s5 + $0x198] sm:$0xff]  ;;  %v1264_v62 = vld [vmem:[%s1965_s5 + $0x170] sm:$0xff] }
  0x2b   :  { %v1275_v63 = vld [vmem:[%s1965_s5 + $0x1c8] sm:$0xff]  ;;  %v1276_v1 = vld [vmem:[%s1965_s5 + $0x1d0] sm:$0xff]  ;;  %v1270_v2 = vld [vmem:[%s1965_s5 + $0x1a0] sm:$0xff] }
  0x2c   :  { %v39_v5 = vld [vmem:[%s1960_s0] sm:$0x7]  ;;  %v40_v6 = vld [vmem:[%s1960_s0 + $0x4] sm:$0x7]  ;;  %v1271_v7 = vld [vmem:[%s1965_s5 + $0x1a8] sm:$0xff] }
  0x2d   :  { %v1265_v9 = vld [vmem:[%s1965_s5 + $0x178] sm:$0xff]  ;;  %v50_v12 = vrot.slane %v39_v5, %v1608_v3  ;;  %v54_v13 = vrot.slane %v40_v6, %v1608_v3  ;;  %v67_v14 = vrot.slane %v39_v5, %v1611_v4  ;;  %v71_v15 = vrot.slane %v40_v6, %v1611_v4  ;;  %v1272_v16 = vld [vmem:[%s1965_s5 + $0x1b0] sm:$0xff] }
  0x2e   :  { %296 = vperm.xlu1 %1331, %v1231_v23   ;;  %223 = vperm.xlu0 %1330, %v193_v24   ;;  %v86_v17 = vrot.slane %v39_v5, %v1623_v8  ;;  %v90_v18 = vrot.slane %v40_v6, %v1623_v8  ;;  %v1277_v19 = vld [vmem:[%s1965_s5 + $0x1d8] sm:$0xff] }
  0x2f   :  { %v1281_v5 = vld [vmem:[%s1965_s5 + $0x1f8] sm:$0xff] }
  0x32   :  { %449 = vperm.xlu1 %1331, %v1242_v25   ;;  %375 = vperm.xlu0 %1330, %v1237_v26   ;;  %v1273_v26 = vld [vmem:[%s1965_s5 + $0x1b8] sm:$0xff] }
  0x36   :  { %228 = vperm.xlu1 %1331, %v194_v27   ;;  %454 = vperm.xlu0 %1330, %v1243_v28  }
  0x3a   :  { %380 = vperm.xlu1 %1331, %v1238_v29   ;;  %301 = vperm.xlu0 %1330, %v1232_v30  }
  0x3e   :  { %233 = vperm.xlu1 %1331, %v195_v31   ;;  %459 = vperm.xlu0 %1330, %v1244_v32   ;;  %v1278_v31 = vld [vmem:[%s1965_s5 + $0x1e0] sm:$0xff] }
  0x42   :  { %385 = vperm.xlu1 %1331, %v1239_v33   ;;  %306 = vperm.xlu0 %1330, %v1233_v34  }
  0x46   :  { %538 = vperm.xlu1 %1331, %v1250_v35   ;;  %464 = vperm.xlu0 %1330, %v1245_v36   ;;  %v883_v36 = vld [vmem:[%s1966_s6] sm:$0xff] }
  0x4a   :  { %390 = vperm.xlu1 %1331, %v1240_v37   ;;  %543 = vperm.xlu0 %1330, %v1251_v38  }
  0x4e   :  { %548 = vperm.xlu1 %1331, %v1252_v39   ;;  %469 = vperm.xlu0 %1330, %v1246_v40   ;;  %v1279_v39 = vld [vmem:[%s1965_s5 + $0x1e8] sm:$0xff]  ;;  %v1653_v40 = vsub.s32 3, %v1599_v0 }
  0x52   :  { %474 = vperm.xlu1 %1331, %v1247_v41   ;;  %395 = vperm.xlu0 %1330, %v1241_v42  }
  0x56   :  { %627 = vperm.xlu1 %1331, %v1258_v43   ;;  %553 = vperm.xlu0 %1330, %v1253_v44  }
  0x5a   :  { %479 = vperm.xlu1 %1331, %v1248_v45   ;;  %632 = vperm.xlu0 %1330, %v1259_v46   ;;  %v1280_v45 = vld [vmem:[%s1965_s5 + $0x1f0] sm:$0xff] }
  0x5e   :  { %637 = vperm.xlu1 %1331, %v1260_v47   ;;  %558 = vperm.xlu0 %1330, %v1254_v48  }
  0x62   :  { %563 = vperm.xlu1 %1331, %v1255_v49   ;;  %484 = vperm.xlu0 %1330, %v1249_v50   ;;  %v884_v50 = vld [vmem:[%s1966_s6 + $0x8] sm:$0xff] }
  0x66   :  { %716 = vperm.xlu1 %1331, %v1266_v51   ;;  %642 = vperm.xlu0 %1330, %v1261_v52  }
  0x6a   :  { %568 = vperm.xlu1 %1331, %v1256_v53   ;;  %721 = vperm.xlu0 %1330, %v1267_v54  }
  0x6e   :  { %726 = vperm.xlu1 %1331, %v1268_v55   ;;  %647 = vperm.xlu0 %1330, %v1262_v56  }
  0x72   :  { %652 = vperm.xlu1 %1331, %v1263_v57   ;;  %573 = vperm.xlu0 %1330, %v1257_v58  }
  0x76   :  { %805 = vperm.xlu1 %1331, %v1274_v59   ;;  %731 = vperm.xlu0 %1330, %v1269_v60  }
  0x7a   :  { %657 = vperm.xlu1 %1331, %v1264_v62   ;;  %810 = vperm.xlu0 %1330, %v1275_v63  }
  0x7e   :  { %815 = vperm.xlu1 %1331, %v1276_v1   ;;  %736 = vperm.xlu0 %1330, %v1270_v2  }
  0x81   :  { %v81_v10 = vpop.permute.xlu1 %80  ;;  %v45_v11 = vpop.permute.xlu0 %44 }
  0x82   :  { %741 = vperm.xlu1 %1331, %v1271_v7   ;;  %662 = vperm.xlu0 %1330, %v1265_v9   ;;  %v55_v22 = vmul.f32 %v50_v12, %v45_v11  ;;  %v56_v23 = vmul.f32 %v54_v13, %v45_v11  ;;  %v91_v27 = vmul.f32 %v86_v17, %v81_v10  ;;  %v885_v9 = vld [vmem:[%s1966_s6 + $0x10] sm:$0xff]  ;;  %v886_v17 = vld [vmem:[%s1966_s6 + $0x18] sm:$0xff] }
  0x83   :  { %v92_v28 = vmul.f32 %v90_v18, %v81_v10 }
  0x85   :  { %v99_v20 = vpop.permute.xlu1 %98  ;;  %v62_v21 = vpop.permute.xlu0 %61 }
  0x86   :  { %v72_v24 = vmul.f32 %v67_v14, %v62_v21  ;;  %v73_v25 = vmul.f32 %v71_v15, %v62_v21  ;;  %746 = vperm.xlu1 %1331, %v1272_v16   ;;  %820 = vperm.xlu0 %1330, %v1277_v19   ;;  %v887_v14 = vld [vmem:[%s1966_s6 + $0x20] sm:$0xff] }
  0x88   :  { %v74_v29 = vadd.f32 %v72_v24, %v55_v22  ;;  %v75_v30 = vadd.f32 %v73_v25, %v56_v23  ;;  %v889_v22 = vld [vmem:[%s1966_s6 + $0x30] sm:$0xff]  ;;  %v888_v25 = vld [vmem:[%s1966_s6 + $0x28] sm:$0xff] }
  0x89   :  { %v126_v32 = vpop.permute.xlu1 %125  ;;  %v109_v33 = vpop.permute.xlu0 %108 }
  0x8a   :  { %v93_v34 = vadd.f32 %v91_v27, %v74_v29  ;;  %v94_v35 = vadd.f32 %v92_v28, %v75_v30  ;;  %751 = vperm.xlu1 %1331, %v1273_v26   ;;  %825 = vperm.xlu0 %1330, %v1278_v31  }
  0x8c   :  { %v101_v37 = vadd.f32 %v99_v20, %v93_v34  ;;  %v102_v38 = vadd.f32 %v99_v20, %v94_v35 }
  0x8d   :  { %v164_v41 = vpop.permute.xlu1 %163  ;;  %v145_v42 = vpop.permute.xlu0 %144 }
  0x8e   :  { %v103_v43 = vmax.f32 %v101_v37, 0.0  ;;  %v104_v44 = vmax.f32 %v102_v38, 0.0  ;;  %893 = vperm.xlu1 %1331, %v883_v36   ;;  %830 = vperm.xlu0 %1330, %v1279_v39  }
  0x90   :  { %v131_v46 = vrot.slane %v103_v43, %v1611_v4  ;;  %v135_v47 = vrot.slane %v104_v44, %v1611_v4  ;;  %v114_v48 = vrot.slane %v103_v43, %v1608_v3  ;;  %v118_v49 = vrot.slane %v104_v44, %v1608_v3 }
  0x91   :  { %v169_v51 = vrot.slane %v103_v43, %v1653_v40  ;;  %v173_v52 = vrot.slane %v104_v44, %v1653_v40  ;;  %v150_v53 = vrot.slane %v103_v43, %v1623_v8  ;;  %v154_v54 = vrot.slane %v104_v44, %v1623_v8  ;;  %v199_v55 = vpop.permute.xlu1 %198  ;;  %v182_v56 = vpop.permute.xlu0 %181 }
  0x92   :  { %v136_v57 = vmul.f32 %v131_v46, %v126_v32  ;;  %v137_v58 = vmul.f32 %v135_v47, %v126_v32  ;;  %v119_v59 = vmul.f32 %v114_v48, %v109_v33  ;;  %v120_v60 = vmul.f32 %v118_v49, %v109_v33  ;;  %835 = vperm.xlu1 %1331, %v1280_v45  }
  0x93   :  { %v174_v62 = vmul.f32 %v169_v51, %v164_v41  ;;  %v175_v63 = vmul.f32 %v173_v52, %v164_v41  ;;  %v155_v1 = vmul.f32 %v150_v53, %v145_v42  ;;  %v156_v2 = vmul.f32 %v154_v54, %v145_v42  ;;  %898 = vperm.xlu0 %1330, %v884_v50  }
  0x94   :  { %v138_v6 = vadd.f32 %v136_v57, %v119_v59  ;;  %v139_v7 = vadd.f32 %v137_v58, %v120_v60 }
  0x95   :  { %v272_v10 = vpop.permute.xlu1 %271  ;;  %v204_v11 = vpop.permute.xlu0 %203 }
  0x96   :  { %v157_v12 = vadd.f32 %v155_v1, %v138_v6  ;;  %v158_v13 = vadd.f32 %v156_v2, %v139_v7  ;;  %840 = vperm.xlu1 %1331, %v1281_v5  }
  0x97   :  { %903 = vperm.xlu0 %1330, %v885_v9  }
  0x98   :  { %v176_v15 = vadd.f32 %v174_v62, %v157_v12  ;;  %v177_v16 = vadd.f32 %v175_v63, %v158_v13 }
  0x99   :  { %v209_v18 = vpop.permute.xlu1 %208  ;;  %v277_v19 = vpop.permute.xlu0 %276 }
  0x9a   :  { %v184_v20 = vadd.f32 %v182_v56, %v176_v15  ;;  %v185_v21 = vadd.f32 %v182_v56, %v177_v16  ;;  %913 = vperm.xlu1 %1331, %v887_v14  }
  0x9b   :  { %908 = vperm.xlu0 %1330, %v886_v17  }
  0x9c   :  { %v1684_v23 = vmax.f32 %v184_v20, 0.0  ;;  %v1686_v24 = vmax.f32 %v185_v21, 0.0 }
  0x9d   :  { %v214_v26 = vpop.permute.xlu1 %213  ;;  %v282_v27 = vpop.permute.xlu0 %281 }
  0x9e   :  { %v1693_v28 = vrot.slane %v1684_v23, %v1608_v3  ;;  %v1697_v29 = vrot.slane %v1686_v24, %v1608_v3  ;;  %v1701_v30 = vrot.slane %v1684_v23, %v1611_v4  ;;  %v1705_v31 = vrot.slane %v1686_v24, %v1611_v4  ;;  %923 = vperm.xlu1 %1331, %v889_v22   ;;  %v890_v4 = vld [vmem:[%s1966_s6 + $0x38] sm:$0xff] }
  0x9f   :  { %918 = vperm.xlu0 %1330, %v888_v25   ;;  %v1709_v32 = vrot.slane %v1684_v23, %v1623_v8  ;;  %v1713_v33 = vrot.slane %v1686_v24, %v1623_v8 }
  0xa0   :  { %v244_v3 = vmul.f32 %v1693_v28, %v199_v55  ;;  %v252_v34 = vmul.f32 %v1697_v29, %v199_v55  ;;  %v317_v35 = vmul.f32 %v1701_v30, %v272_v10  ;;  %v325_v36 = vmul.f32 %v1705_v31, %v272_v10 }
  0xa1   :  { %v245_v37 = vmul.f32 %v1693_v28, %v204_v11  ;;  %v253_v38 = vmul.f32 %v1697_v29, %v204_v11  ;;  %v246_v39 = vmul.f32 %v1693_v28, %v209_v18  ;;  %v254_v8 = vmul.f32 %v1697_v29, %v209_v18  ;;  %v361_v41 = vpop.permute.xlu1 %360  ;;  %v287_v42 = vpop.permute.xlu0 %286 }
  0xa2   :  { %v333_v43 = vadd.f32 %v317_v35, %v244_v3  ;;  %v341_v44 = vadd.f32 %v325_v36, %v252_v34  ;;  %v318_v45 = vmul.f32 %v1701_v30, %v277_v19  ;;  %v326_v46 = vmul.f32 %v1705_v31, %v277_v19 }
  0xa3   :  { %v247_v47 = vmul.f32 %v1693_v28, %v214_v26  ;;  %v255_v48 = vmul.f32 %v1697_v29, %v214_v26  ;;  %v319_v49 = vmul.f32 %v1701_v30, %v282_v27  ;;  %v327_v50 = vmul.f32 %v1705_v31, %v282_v27  ;;  %928 = vperm.xlu0 %1330, %v890_v4  }
  0xa4   :  { %v334_v51 = vadd.f32 %v318_v45, %v245_v37  ;;  %v342_v52 = vadd.f32 %v326_v46, %v253_v38  ;;  %v406_v53 = vmul.f32 %v1709_v32, %v361_v41  ;;  %v414_v54 = vmul.f32 %v1713_v33, %v361_v41 }
  0xa5   :  { %v335_v55 = vadd.f32 %v319_v49, %v246_v39  ;;  %v343_v56 = vadd.f32 %v327_v50, %v254_v8  ;;  %v320_v57 = vmul.f32 %v1701_v30, %v287_v42  ;;  %v328_v58 = vmul.f32 %v1705_v31, %v287_v42  ;;  %v219_v59 = vpop.permute.xlu1 %218  ;;  %v366_v60 = vpop.permute.xlu0 %365 }
  0xa6   :  { %v422_v62 = vadd.f32 %v406_v53, %v333_v43  ;;  %v430_v63 = vadd.f32 %v414_v54, %v341_v44  ;;  %v248_v1 = vmul.f32 %v1693_v28, %v219_v59  ;;  %v256_v2 = vmul.f32 %v1697_v29, %v219_v59 }
  0xa7   :  { %v336_v5 = vadd.f32 %v320_v57, %v247_v47  ;;  %v344_v6 = vadd.f32 %v328_v58, %v255_v48  ;;  %v407_v7 = vmul.f32 %v1709_v32, %v366_v60  ;;  %v415_v9 = vmul.f32 %v1713_v33, %v366_v60 }
  0xa8   :  { %v1750_v4 = vrot.slane %v1684_v23, %v1653_v40  ;;  %v1754_v37 = vrot.slane %v1686_v24, %v1653_v40 }
  0xa9   :  { %v423_v10 = vadd.f32 %v407_v7, %v334_v51  ;;  %v431_v11 = vadd.f32 %v415_v9, %v342_v52  ;;  %v371_v12 = vpop.permute.xlu1 %370  ;;  %v292_v13 = vpop.permute.xlu0 %291 }
  0xaa   :  { %v408_v14 = vmul.f32 %v1709_v32, %v371_v12  ;;  %v416_v15 = vmul.f32 %v1713_v33, %v371_v12  ;;  %v321_v16 = vmul.f32 %v1701_v30, %v292_v13  ;;  %v329_v17 = vmul.f32 %v1705_v31, %v292_v13 }
  0xab   :  { %v578_v12 = vsub.s32 4, %v1599_v0 }
  0xac   :  { %v424_v18 = vadd.f32 %v408_v14, %v335_v55  ;;  %v432_v19 = vadd.f32 %v416_v15, %v343_v56  ;;  %v337_v20 = vadd.f32 %v321_v16, %v248_v1  ;;  %v345_v21 = vadd.f32 %v329_v17, %v256_v2 }
  0xad   :  { %v297_v22 = vpop.permute.xlu1 %296  ;;  %v224_v25 = vpop.permute.xlu0 %223 }
  0xae   :  { %v322_v26 = vmul.f32 %v1701_v30, %v297_v22  ;;  %v330_v27 = vmul.f32 %v1705_v31, %v297_v22  ;;  %v249_v3 = vmul.f32 %v1693_v28, %v224_v25  ;;  %v257_v34 = vmul.f32 %v1697_v29, %v224_v25 }
  0xaf   :  { %v1781_v22 = vrot.slane %v1686_v24, %v578_v12 }
  0xb0   :  { %v338_v35 = vadd.f32 %v322_v26, %v249_v3  ;;  %v346_v36 = vadd.f32 %v330_v27, %v257_v34 }
  0xb1   :  { %v450_v38 = vpop.permute.xlu1 %449  ;;  %v376_v39 = vpop.permute.xlu0 %375 }
  0xb2   :  { %v495_v8 = vmul.f32 %v1750_v4, %v450_v38  ;;  %v503_v41 = vmul.f32 %v1754_v37, %v450_v38  ;;  %v409_v42 = vmul.f32 %v1709_v32, %v376_v39  ;;  %v417_v43 = vmul.f32 %v1713_v33, %v376_v39 }
  0xb4   :  { %v511_v44 = vadd.f32 %v495_v8, %v422_v62  ;;  %v519_v45 = vadd.f32 %v503_v41, %v430_v63  ;;  %v425_v46 = vadd.f32 %v409_v42, %v336_v5  ;;  %v433_v47 = vadd.f32 %v417_v43, %v344_v6 }
  0xb5   :  { %v229_v48 = vpop.permute.xlu1 %228  ;;  %v455_v49 = vpop.permute.xlu0 %454 }
  0xb6   :  { %v250_v50 = vmul.f32 %v1693_v28, %v229_v48  ;;  %v258_v40 = vmul.f32 %v1697_v29, %v229_v48  ;;  %v496_v51 = vmul.f32 %v1750_v4, %v455_v49  ;;  %v504_v52 = vmul.f32 %v1754_v37, %v455_v49 }
  0xb8   :  { %v512_v53 = vadd.f32 %v496_v51, %v423_v10  ;;  %v520_v54 = vadd.f32 %v504_v52, %v431_v11 }
  0xb9   :  { %v381_v55 = vpop.permute.xlu1 %380  ;;  %v302_v56 = vpop.permute.xlu0 %301 }
  0xba   :  { %v410_v57 = vmul.f32 %v1709_v32, %v381_v55  ;;  %v418_v58 = vmul.f32 %v1713_v33, %v381_v55  ;;  %v323_v59 = vmul.f32 %v1701_v30, %v302_v56  ;;  %v331_v60 = vmul.f32 %v1705_v31, %v302_v56 }
  0xbc   :  { %v426_v62 = vadd.f32 %v410_v57, %v337_v20  ;;  %v434_v63 = vadd.f32 %v418_v58, %v345_v21  ;;  %v339_v1 = vadd.f32 %v323_v59, %v250_v50  ;;  %v347_v2 = vadd.f32 %v331_v60, %v258_v40 }
  0xbd   :  { %v234_v5 = vpop.permute.xlu1 %233  ;;  %v460_v6 = vpop.permute.xlu0 %459  ;;  %v667_v58 = vsub.s32 5, %v1599_v0 }
  0xbe   :  { %v251_v7 = vmul.f32 %v1693_v28, %v234_v5  ;;  %v259_v9 = vmul.f32 %v1697_v29, %v234_v5  ;;  %v497_v10 = vmul.f32 %v1750_v4, %v460_v6  ;;  %v505_v11 = vmul.f32 %v1754_v37, %v460_v6 }
  0xbf   :  { %v1778_v29 = vrot.slane %v1684_v23, %v578_v12 }
  0xc0   :  { %v513_v13 = vadd.f32 %v497_v10, %v424_v18  ;;  %v521_v14 = vadd.f32 %v505_v11, %v432_v19  ;;  %v1801_v10 = vrot.slane %v1684_v23, %v667_v58  ;;  %v1804_v11 = vrot.slane %v1686_v24, %v667_v58 }
  0xc1   :  { %v386_v15 = vpop.permute.xlu1 %385  ;;  %v307_v16 = vpop.permute.xlu0 %306 }
  0xc2   :  { %v411_v17 = vmul.f32 %v1709_v32, %v386_v15  ;;  %v419_v20 = vmul.f32 %v1713_v33, %v386_v15  ;;  %v324_v21 = vmul.f32 %v1701_v30, %v307_v16  ;;  %v332_v28 = vmul.f32 %v1705_v31, %v307_v16 }
  0xc4   :  { %v427_v25 = vadd.f32 %v411_v17, %v338_v35  ;;  %v435_v26 = vadd.f32 %v419_v20, %v346_v36  ;;  %v340_v18 = vadd.f32 %v324_v21, %v251_v7  ;;  %v348_v19 = vadd.f32 %v332_v28, %v259_v9 }
  0xc5   :  { %v539_v27 = vpop.permute.xlu1 %538  ;;  %v465_v3 = vpop.permute.xlu0 %464 }
  0xc6   :  { %v584_v34 = vmul.f32 %v1778_v29, %v539_v27  ;;  %v592_v38 = vmul.f32 %v1781_v22, %v539_v27  ;;  %v498_v30 = vmul.f32 %v1750_v4, %v465_v3  ;;  %v506_v31 = vmul.f32 %v1754_v37, %v465_v3 }
  0xc8   :  { %v600_v39 = vadd.f32 %v584_v34, %v511_v44  ;;  %v608_v8 = vadd.f32 %v592_v38, %v519_v45  ;;  %v514_v41 = vadd.f32 %v498_v30, %v425_v46  ;;  %v522_v42 = vadd.f32 %v506_v31, %v433_v47 }
  0xc9   :  { %v391_v43 = vpop.permute.xlu1 %390  ;;  %v544_v48 = vpop.permute.xlu0 %543 }
  0xca   :  { %v412_v35 = vmul.f32 %v1709_v32, %v391_v43  ;;  %v420_v36 = vmul.f32 %v1713_v33, %v391_v43  ;;  %v585_v49 = vmul.f32 %v1778_v29, %v544_v48  ;;  %v593_v50 = vmul.f32 %v1781_v22, %v544_v48 }
  0xcc   :  { %v428_v40 = vadd.f32 %v412_v35, %v339_v1  ;;  %v436_v51 = vadd.f32 %v420_v36, %v347_v2  ;;  %v601_v52 = vadd.f32 %v585_v49, %v512_v53  ;;  %v609_v55 = vadd.f32 %v593_v50, %v520_v54 }
  0xcd   :  { %v549_v56 = vpop.permute.xlu1 %548  ;;  %v470_v57 = vpop.permute.xlu0 %469  ;;  %v756_v36 = vsub.s32 6, %v1599_v0 }
  0xce   :  { %v586_v44 = vmul.f32 %v1778_v29, %v549_v56  ;;  %v594_v45 = vmul.f32 %v1781_v22, %v549_v56  ;;  %v499_v46 = vmul.f32 %v1750_v4, %v470_v57  ;;  %v507_v47 = vmul.f32 %v1754_v37, %v470_v57 }
  0xd0   :  { %v602_v59 = vadd.f32 %v586_v44, %v513_v13  ;;  %v610_v60 = vadd.f32 %v594_v45, %v521_v14  ;;  %v515_v5 = vadd.f32 %v499_v46, %v426_v62  ;;  %v523_v6 = vadd.f32 %v507_v47, %v434_v63 }
  0xd1   :  { %v475_v1 = vpop.permute.xlu1 %474  ;;  %v396_v2 = vpop.permute.xlu0 %395  ;;  %v1824_v46 = vrot.slane %v1684_v23, %v756_v36  ;;  %v1827_v47 = vrot.slane %v1686_v24, %v756_v36 }
  0xd2   :  { %v500_v53 = vmul.f32 %v1750_v4, %v475_v1  ;;  %v508_v54 = vmul.f32 %v1754_v37, %v475_v1  ;;  %v413_v7 = vmul.f32 %v1709_v32, %v396_v2  ;;  %v421_v9 = vmul.f32 %v1713_v33, %v396_v2 }
  0xd4   :  { %v516_v12 = vadd.f32 %v500_v53, %v427_v25  ;;  %v524_v13 = vadd.f32 %v508_v54, %v435_v26  ;;  %v429_v62 = vadd.f32 %v413_v7, %v340_v18  ;;  %v437_v63 = vadd.f32 %v421_v9, %v348_v19 }
  0xd5   :  { %v628_v14 = vpop.permute.xlu1 %627  ;;  %v554_v15 = vpop.permute.xlu0 %553 }
  0xd6   :  { %v673_v16 = vmul.f32 %v1801_v10, %v628_v14  ;;  %v681_v17 = vmul.f32 %v1804_v11, %v628_v14  ;;  %v587_v32 = vmul.f32 %v1778_v29, %v554_v15  ;;  %v595_v33 = vmul.f32 %v1781_v22, %v554_v15 }
  0xd8   :  { %v689_v20 = vadd.f32 %v673_v16, %v600_v39  ;;  %v697_v21 = vadd.f32 %v681_v17, %v608_v8  ;;  %v603_v28 = vadd.f32 %v587_v32, %v514_v41  ;;  %v611_v27 = vadd.f32 %v595_v33, %v522_v42 }
  0xd9   :  { %v480_v3 = vpop.permute.xlu1 %479  ;;  %v633_v34 = vpop.permute.xlu0 %632 }
  0xda   :  { %v501_v25 = vmul.f32 %v1750_v4, %v480_v3  ;;  %v509_v26 = vmul.f32 %v1754_v37, %v480_v3  ;;  %v674_v18 = vmul.f32 %v1801_v10, %v633_v34  ;;  %v682_v19 = vmul.f32 %v1804_v11, %v633_v34 }
  0xdc   :  { %v517_v38 = vadd.f32 %v501_v25, %v428_v40  ;;  %v525_v30 = vadd.f32 %v509_v26, %v436_v51  ;;  %v690_v31 = vadd.f32 %v674_v18, %v601_v52  ;;  %v698_v43 = vadd.f32 %v682_v19, %v609_v55 }
  0xdd   :  { %v638_v48 = vpop.permute.xlu1 %637  ;;  %v559_v35 = vpop.permute.xlu0 %558  ;;  %v845_v26 = vsub.s32 7, %v1599_v0 }
  0xde   :  { %v675_v39 = vmul.f32 %v1801_v10, %v638_v48  ;;  %v683_v8 = vmul.f32 %v1804_v11, %v638_v48  ;;  %v588_v41 = vmul.f32 %v1778_v29, %v559_v35  ;;  %v596_v42 = vmul.f32 %v1781_v22, %v559_v35 }
  0xe0   :  { %v691_v49 = vadd.f32 %v675_v39, %v602_v59  ;;  %v699_v50 = vadd.f32 %v683_v8, %v610_v60  ;;  %v604_v56 = vadd.f32 %v588_v41, %v515_v5  ;;  %v612_v57 = vadd.f32 %v596_v42, %v523_v6 }
  0xe1   :  { %v564_v40 = vpop.permute.xlu1 %563  ;;  %v485_v51 = vpop.permute.xlu0 %484  ;;  %v1847_v41 = vrot.slane %v1684_v23, %v845_v26  ;;  %v1850_v42 = vrot.slane %v1686_v24, %v845_v26 }
  0xe2   :  { %v589_v52 = vmul.f32 %v1778_v29, %v564_v40  ;;  %v597_v55 = vmul.f32 %v1781_v22, %v564_v40  ;;  %v502_v44 = vmul.f32 %v1750_v4, %v485_v51  ;;  %v510_v45 = vmul.f32 %v1754_v37, %v485_v51 }
  0xe4   :  { %v605_v58 = vadd.f32 %v589_v52, %v516_v12  ;;  %v613_v59 = vadd.f32 %v597_v55, %v524_v13  ;;  %v518_v60 = vadd.f32 %v502_v44, %v429_v62  ;;  %v526_v5 = vadd.f32 %v510_v45, %v437_v63 }
  0xe5   :  { %v717_v6 = vpop.permute.xlu1 %716  ;;  %v643_v1 = vpop.permute.xlu0 %642 }
  0xe6   :  { %v762_v2 = vmul.f32 %v1824_v46, %v717_v6  ;;  %v770_v53 = vmul.f32 %v1827_v47, %v717_v6  ;;  %v676_v4 = vmul.f32 %v1801_v10, %v643_v1  ;;  %v684_v37 = vmul.f32 %v1804_v11, %v643_v1 }
  0xe8   :  { %v778_v54 = vadd.f32 %v762_v2, %v689_v20  ;;  %v786_v7 = vadd.f32 %v770_v53, %v697_v21  ;;  %v692_v9 = vadd.f32 %v676_v4, %v603_v28  ;;  %v700_v14 = vadd.f32 %v684_v37, %v611_v27 }
  0xe9   :  { %v569_v15 = vpop.permute.xlu1 %568  ;;  %v722_v16 = vpop.permute.xlu0 %721 }
  0xea   :  { %v590_v12 = vmul.f32 %v1778_v29, %v569_v15  ;;  %v598_v13 = vmul.f32 %v1781_v22, %v569_v15  ;;  %v763_v62 = vmul.f32 %v1824_v46, %v722_v16  ;;  %v771_v63 = vmul.f32 %v1827_v47, %v722_v16 }
  0xec   :  { %v606_v17 = vadd.f32 %v590_v12, %v517_v38  ;;  %v614_v32 = vadd.f32 %v598_v13, %v525_v30  ;;  %v779_v33 = vadd.f32 %v763_v62, %v690_v31  ;;  %v787_v3 = vadd.f32 %v771_v63, %v698_v43 }
  0xed   :  { %v727_v34 = vpop.permute.xlu1 %726  ;;  %v648_v25 = vpop.permute.xlu0 %647 }
  0xee   :  { %v764_v20 = vmul.f32 %v1824_v46, %v727_v34  ;;  %v772_v21 = vmul.f32 %v1827_v47, %v727_v34  ;;  %v677_v28 = vmul.f32 %v1801_v10, %v648_v25  ;;  %v685_v27 = vmul.f32 %v1804_v11, %v648_v25 }
  0xf0   :  { %v780_v18 = vadd.f32 %v764_v20, %v691_v49  ;;  %v788_v19 = vadd.f32 %v772_v21, %v699_v50  ;;  %v693_v48 = vadd.f32 %v677_v28, %v604_v56  ;;  %v701_v35 = vadd.f32 %v685_v27, %v612_v57 }
  0xf1   :  { %v653_v38 = vpop.permute.xlu1 %652  ;;  %v574_v30 = vpop.permute.xlu0 %573 }
  0xf2   :  { %v678_v31 = vmul.f32 %v1801_v10, %v653_v38  ;;  %v686_v43 = vmul.f32 %v1804_v11, %v653_v38  ;;  %v591_v39 = vmul.f32 %v1778_v29, %v574_v30  ;;  %v599_v8 = vmul.f32 %v1781_v22, %v574_v30 }
  0xf4   :  { %v694_v36 = vadd.f32 %v678_v31, %v605_v58  ;;  %v702_v49 = vadd.f32 %v686_v43, %v613_v59  ;;  %v607_v50 = vadd.f32 %v591_v39, %v518_v60  ;;  %v615_v56 = vadd.f32 %v599_v8, %v526_v5 }
  0xf5   :  { %v806_v57 = vpop.permute.xlu1 %805  ;;  %v732_v40 = vpop.permute.xlu0 %731 }
  0xf6   :  { %v851_v51 = vmul.f32 %v1847_v41, %v806_v57  ;;  %v859_v52 = vmul.f32 %v1850_v42, %v806_v57  ;;  %v765_v29 = vmul.f32 %v1824_v46, %v732_v40  ;;  %v773_v22 = vmul.f32 %v1827_v47, %v732_v40 }
  0xf8   :  { %v781_v55 = vadd.f32 %v765_v29, %v692_v9  ;;  %v789_v23 = vadd.f32 %v773_v22, %v700_v14  ;;  %v867_v44 = vadd.f32 %v851_v51, %v778_v54  ;;  %v1856_v45 = vadd.f32 %v859_v52, %v786_v7 }
  0xf9   :  { %v658_v24 = vpop.permute.xlu1 %657  ;;  %v811_v58 = vpop.permute.xlu0 %810 }
  0xfa   :  { %v679_v59 = vmul.f32 %v1801_v10, %v658_v24  ;;  %v687_v60 = vmul.f32 %v1804_v11, %v658_v24  ;;  %v852_v5 = vmul.f32 %v1847_v41, %v811_v58  ;;  %v860_v6 = vmul.f32 %v1850_v42, %v811_v58 }
  0xfc   :  { %v695_v1 = vadd.f32 %v679_v59, %v606_v17  ;;  %v703_v2 = vadd.f32 %v687_v60, %v614_v32  ;;  %v868_v53 = vadd.f32 %v852_v5, %v779_v33  ;;  %v876_v4 = vadd.f32 %v860_v6, %v787_v3 }
  0xfd   :  { %v816_v37 = vpop.permute.xlu1 %815  ;;  %v737_v9 = vpop.permute.xlu0 %736 }
  0xfe   :  { %v853_v54 = vmul.f32 %v1847_v41, %v816_v37  ;;  %v861_v7 = vmul.f32 %v1850_v42, %v816_v37  ;;  %v766_v14 = vmul.f32 %v1824_v46, %v737_v9  ;;  %v774_v15 = vmul.f32 %v1827_v47, %v737_v9 }
 0x100   :  { %v782_v16 = vadd.f32 %v766_v14, %v693_v48  ;;  %v790_v12 = vadd.f32 %v774_v15, %v701_v35  ;;  %v869_v13 = vadd.f32 %v853_v54, %v780_v18  ;;  %v877_v62 = vadd.f32 %v861_v7, %v788_v19 }
 0x101   :  { %v742_v63 = vpop.permute.xlu1 %741  ;;  %v663_v33 = vpop.permute.xlu0 %662 }
 0x102   :  { %v767_v17 = vmul.f32 %v1824_v46, %v742_v63  ;;  %v775_v32 = vmul.f32 %v1827_v47, %v742_v63  ;;  %v680_v3 = vmul.f32 %v1801_v10, %v663_v33  ;;  %v688_v34 = vmul.f32 %v1804_v11, %v663_v33 }
 0x104   :  { %v783_v25 = vadd.f32 %v767_v17, %v694_v36  ;;  %v791_v20 = vadd.f32 %v775_v32, %v702_v49  ;;  %v696_v21 = vadd.f32 %v680_v3, %v607_v50  ;;  %v704_v28 = vadd.f32 %v688_v34, %v615_v56 }
 0x105   :  { %v747_v27 = vpop.permute.xlu1 %746  ;;  %v821_v19 = vpop.permute.xlu0 %820 }
 0x106   :  { %v768_v26 = vmul.f32 %v1824_v46, %v747_v27  ;;  %v776_v18 = vmul.f32 %v1827_v47, %v747_v27  ;;  %v854_v48 = vmul.f32 %v1847_v41, %v821_v19  ;;  %v862_v35 = vmul.f32 %v1850_v42, %v821_v19 }
 0x108   :  { %v784_v38 = vadd.f32 %v768_v26, %v695_v1  ;;  %v792_v30 = vadd.f32 %v776_v18, %v703_v2  ;;  %v870_v10 = vadd.f32 %v854_v48, %v781_v55  ;;  %v878_v43 = vadd.f32 %v862_v35, %v789_v23 }
 0x109   :  { %v752_v31 = vpop.permute.xlu1 %751  ;;  %v826_v8 = vpop.permute.xlu0 %825 }
 0x10a   :  { %v769_v11 = vmul.f32 %v1824_v46, %v752_v31  ;;  %v777_v39 = vmul.f32 %v1827_v47, %v752_v31  ;;  %v855_v36 = vmul.f32 %v1847_v41, %v826_v8  ;;  %v863_v49 = vmul.f32 %v1850_v42, %v826_v8  ;;  %v1117_v8 = vld [vmem:[%s1967_s7] sm:$0xff] }
 0x10c   :  { %v785_v50 = vadd.f32 %v769_v11, %v696_v21  ;;  %v793_v56 = vadd.f32 %v777_v39, %v704_v28  ;;  %v871_v40 = vadd.f32 %v855_v36, %v782_v16  ;;  %v879_v51 = vadd.f32 %v863_v49, %v790_v12  ;;  %v1118_v36 = vld [vmem:[%s1967_s7 + $0x8] sm:$0xff] }
 0x10d   :  { %v894_v57 = vpop.permute.xlu1 %893  ;;  %v831_v29 = vpop.permute.xlu0 %830  ;;  %v1357_v49 = vmov 0.0|0.0  }
 0x10e   :  { %v931_v52 = vadd.f32 %v894_v57, %v867_v44  ;;  %v856_v22 = vmul.f32 %v1847_v41, %v831_v29  ;;  %v864_v55 = vmul.f32 %v1850_v42, %v831_v29  ;;  %v939_v2 = vadd.f32 %v894_v57, %v1856_v45  ;;  %1312 = vmatprep.subr.bf16.mxu0 %v1357_v49  ;;  %v1119_v57 = vld [vmem:[%s1967_s7 + $0x10] sm:$0xff]  ;;  %v1122_v29 = vld [vmem:[%s1967_s7 + $0x28] sm:$0xff] }
 0x110   :  { %v949_v46 = vsel %vm948_vm0, %v931_v52, -inf  ;;  %v872_v23 = vadd.f32 %v856_v22, %v783_v25  ;;  %v880_v24 = vadd.f32 %v864_v55, %v791_v20  ;;  %v973_v63 = vsel %vm948_vm0, %v939_v2, -inf }
 0x111   :  { %v836_v47 = vpop.permute.xlu1 %835  ;;  %950 = vmax.xlane.f32.xlu1 %v949_v46  ;;  %v1360_v22 = vmov 0.0   ;;  %v1123_v46 = vld [vmem:[%s1967_s7 + $0x30] sm:$0xff] }
 0x112   :  { %v857_v58 = vmul.f32 %v1847_v41, %v836_v47  ;;  %v865_v59 = vmul.f32 %v1850_v42, %v836_v47  ;;  %v899_v60 = vpop.permute.xlu0 %898  ;;  %1309 = vmatprep.mubr.msk.f32.mxu0 %vm1359_vm2, %v1360_v22  ;;  %v1124_v47 = vld [vmem:[%s1967_s7 + $0x38] sm:$0xff] }
 0x113   :  { %v932_v5 = vadd.f32 %v899_v60, %v868_v53  ;;  %v940_v6 = vadd.f32 %v899_v60, %v876_v4 }
 0x114   :  { %v873_v1 = vadd.f32 %v857_v58, %v784_v38  ;;  %v881_v44 = vadd.f32 %v865_v59, %v792_v30 }
 0x115   :  { %v841_v37 = vpop.permute.xlu1 %840  ;;  %v952_v9 = vsel %vm948_vm0, %v932_v5, -inf  ;;  %v976_v54 = vsel %vm948_vm0, %v940_v6, -inf }
 0x116   :  { %v858_v7 = vmul.f32 %v1847_v41, %v841_v37  ;;  %v866_v14 = vmul.f32 %v1850_v42, %v841_v37  ;;  %v904_v15 = vpop.permute.xlu0 %903  ;;  %953 = vmax.xlane.f32.xlu0 %v952_v9  ;;  %977 = vmax.xlane.f32.xlu1 %v976_v54 }
 0x117   :  { %v941_v16 = vadd.f32 %v904_v15, %v877_v62  ;;  %v933_v4 = vadd.f32 %v904_v15, %v869_v13 }
 0x118   :  { %v874_v12 = vadd.f32 %v858_v7, %v785_v50  ;;  %v882_v53 = vadd.f32 %v866_v14, %v793_v56  ;;  %v1313_v50 = vpack.c.bf16 %v1118_v36, %v1117_v8  ;;  %v1358_v56 = vmov -inf  }
 0x119   :  { %v979_v45 = vsel %vm948_vm0, %v941_v16, -inf  ;;  %v914_v17 = vpop.permute.xlu1 %913  ;;  %v955_v42 = vsel %vm948_vm0, %v933_v4, -inf  ;;  %38 = vst.msk [vmem:[#allocation2] sm:$0x3] %vm37_vm1, %v1358_v56 }
 0x11a   :  { %v909_v32 = vpop.permute.xlu0 %908  ;;  %974 = vmax.xlane.f32.xlu0 %v973_v63  ;;  %980 = vmax.xlane.f32.xlu1 %v979_v45  ;;  %v943_v3 = vadd.f32 %v914_v17, %v879_v51  ;;  %v935_v62 = vadd.f32 %v914_v17, %v871_v40  ;;  %v1120_v40 = vld [vmem:[%s1967_s7 + $0x18] sm:$0xff]  ;;  %v1121_v51 = vld [vmem:[%s1967_s7 + $0x20] sm:$0xff] }
 0x11b   :  { %v942_v33 = vadd.f32 %v909_v32, %v878_v43  ;;  %v934_v41 = vadd.f32 %v909_v32, %v870_v10  ;;  %1314 = vmatpush3.bf16.msra.mxu0 %v1313_v50  ;;  %v1316_v52 = vpack.c.bf16 %v1120_v40, %v1119_v57  ;;  %v1319_v55 = vpack.c.bf16 %v1122_v29, %v1121_v51 }
 0x11c   :  { %v985_v21 = vsel %vm948_vm0, %v943_v3, -inf  ;;  %v961_v18 = vsel %vm948_vm0, %v935_v62, -inf  ;;  %1315 = vmatprep.subr.bf16.mxu0 %v1357_v49 }
 0x11d   :  { %v982_v34 = vsel %vm948_vm0, %v942_v33, -inf  ;;  %v958_v20 = vsel %vm948_vm0, %v934_v41, -inf  ;;  %v924_v28 = vpop.permute.xlu1 %923 }
 0x11e   :  { %v919_v25 = vpop.permute.xlu0 %918  ;;  %956 = vmax.xlane.f32.xlu0 %v955_v42  ;;  %983 = vmax.xlane.f32.xlu1 %v982_v34  ;;  %v945_v27 = vadd.f32 %v924_v28, %v881_v44  ;;  %v937_v35 = vadd.f32 %v924_v28, %v873_v1  ;;  %v1014_v44 = vand.u32 127, %v47_v61 }
 0x11f   :  { %v944_v13 = vadd.f32 %v919_v25, %v880_v24  ;;  %v936_v26 = vadd.f32 %v919_v25, %v872_v23  ;;  %1317 = vmatpush3.bf16.msra.mxu0 %v1316_v52  ;;  %v1322_v23 = vpack.c.bf16 %v1124_v47, %v1123_v46 }
 0x120   :  { %v991_v31 = vsel %vm948_vm0, %v945_v27, -inf  ;;  %v967_v43 = vsel %vm948_vm0, %v937_v35, -inf  ;;  %1318 = vmatprep.subr.bf16.mxu0 %v1357_v49  ;;  %v1019_v9 = vadd.s32 4294967288, %v1014_v44  ;;  %v1026_v54 = vadd.s32 4294967280, %v1014_v44 }
 0x121   :  { %v988_v19 = vsel %vm948_vm0, %v944_v13, -inf  ;;  %v964_v30 = vsel %vm948_vm0, %v936_v26, -inf  ;;  %v1033_v7 = vadd.s32 4294967272, %v1014_v44  ;;  %v1040_v14 = vadd.s32 4294967264, %v1014_v44 }
 0x122   :  { %959 = vmax.xlane.f32.xlu0 %v958_v20  ;;  %986 = vmax.xlane.f32.xlu1 %v985_v21  ;;  %v929_v48 = vpop.permute.xlu0 %928  ;;  %v1047_v4 = vadd.s32 4294967256, %v1014_v44  ;;  %v1029_v63 = vsub.s32 %v1026_v54, %v1599_v0  ;;  %v1054_v45 = vadd.s32 4294967248, %v1014_v44  ;;  %v1061_v17 = vadd.s32 4294967240, %v1014_v44 }
 0x123   :  { %v946_v38 = vadd.f32 %v929_v48, %v882_v53  ;;  %v938_v10 = vadd.f32 %v929_v48, %v874_v12  ;;  %1320 = vmatpush3.bf16.msra.mxu0 %v1319_v55  ;;  %v1017_v12 = vsub.s32 %v1014_v44, %v1599_v0  ;;  %v1022_v53 = vsub.s32 %v1019_v9, %v1599_v0  ;;  %v947_v55 = vld [vmem:[#allocation2] sm:$0x3] }
 0x124   :  { %1321 = vmatprep.subr.bf16.mxu0 %v1357_v49  ;;  %v1036_v61 = vsub.s32 %v1033_v7, %v1599_v0  ;;  %v1043_v33 = vsub.s32 %v1040_v14, %v1599_v0  ;;  %v1050_v25 = vsub.s32 %v1047_v4, %v1599_v0  ;;  %v1057_v20 = vsub.s32 %v1054_v45, %v1599_v0 }
 0x125   :  { %v994_v11 = vsel %vm948_vm0, %v946_v38, -inf  ;;  %v970_v39 = vsel %vm948_vm0, %v938_v10, -inf  ;;  %v1064_v21 = vsub.s32 %v1061_v17, %v1599_v0 }
 0x126   :  { %962 = vmax.xlane.f32.xlu0 %v961_v18  ;;  %989 = vmax.xlane.f32.xlu1 %v988_v19 }
 0x127   :  { %1323 = vmatpush3.bf16.msra.mxu0 %v1322_v23 }
 0x12a   :  { %965 = vmax.xlane.f32.xlu0 %v964_v30  ;;  %992 = vmax.xlane.f32.xlu1 %v991_v31 }
 0x12e   :  { %968 = vmax.xlane.f32.xlu0 %v967_v43  ;;  %995 = vmax.xlane.f32.xlu1 %v994_v11 }
 0x132   :  { %971 = vmax.xlane.f32.xlu0 %v970_v39 }
 0x19e   :  { %v951_v24 = vpop.xlane.xlu1 %950 }
 0x19f   :  { %v1018_v28 = vrot.slane %v951_v24, %v1017_v12 }
 0x1a3   :  { %v954_v58 = vpop.xlane.xlu0 %953  ;;  %v978_v59 = vpop.xlane.xlu1 %977 }
 0x1a4   :  { %v1023_v42 = vrot.slane %v954_v58, %v1022_v53  ;;  %v1075_v34 = vrot.slane %v978_v59, %v1022_v53  ;;  %v1282_v59 = vld [vmem:[%s1968_s8] ss:$0 sm:$0xff] }
 0x1a6   :  { %v1025_v30 = vsel %vm1024_vm3, %v1023_v42, %v1018_v28 }
 0x1a7   :  { %v975_v60 = vpop.xlane.xlu0 %974  ;;  %v981_v5 = vpop.xlane.xlu1 %980 }
 0x1a8   :  { %v1071_v32 = vrot.slane %v975_v60, %v1017_v12  ;;  %v1080_v62 = vrot.slane %v981_v5, %v1029_v63 }
 0x1aa   :  { %v1076_v27 = vsel %vm1024_vm3, %v1075_v34, %v1071_v32 }
 0x1ab   :  { %v957_v6 = vpop.xlane.xlu0 %956  ;;  %v984_v1 = vpop.xlane.xlu1 %983  ;;  %v1081_v43 = vsel %vm1031_vm4, %v1080_v62, %v1076_v27 }
 0x1ac   :  { %v1030_v13 = vrot.slane %v957_v6, %v1029_v63  ;;  %v1085_v26 = vrot.slane %v984_v1, %v1036_v61 }
 0x1ae   :  { %v1032_v0 = vsel %vm1031_vm4, %v1030_v13, %v1025_v30  ;;  %v1086_v8 = vsel %vm1038_vm5, %v1085_v26, %v1081_v43 }
 0x1af   :  { %v960_v2 = vpop.xlane.xlu0 %959  ;;  %v987_v37 = vpop.xlane.xlu1 %986 }
 0x1b0   :  { %v1037_v18 = vrot.slane %v960_v2, %v1036_v61  ;;  %v1090_v19 = vrot.slane %v987_v37, %v1043_v33 }
 0x1b2   :  { %v1039_v36 = vsel %vm1038_vm5, %v1037_v18, %v1032_v0  ;;  %v1091_v50 = vsel %vm1045_vm6, %v1090_v19, %v1086_v8 }
 0x1b3   :  { %v963_v15 = vpop.xlane.xlu0 %962  ;;  %v990_v16 = vpop.xlane.xlu1 %989 }
 0x1b4   :  { %v1044_v48 = vrot.slane %v963_v15, %v1043_v33  ;;  %v1095_v31 = vrot.slane %v990_v16, %v1050_v25 }
 0x1b6   :  { %v1046_v56 = vsel %vm1045_vm6, %v1044_v48, %v1039_v36  ;;  %v1096_v40 = vsel %vm1052_vm7, %v1095_v31, %v1091_v50 }
 0x1b7   :  { %v966_v3 = vpop.xlane.xlu0 %965  ;;  %v993_v41 = vpop.xlane.xlu1 %992 }
 0x1b8   :  { %v1051_v10 = vrot.slane %v966_v3, %v1050_v25  ;;  %v1100_v11 = vrot.slane %v993_v41, %v1057_v20 }
 0x1ba   :  { %v1053_v51 = vsel %vm1052_vm7, %v1051_v10, %v1046_v56  ;;  %v1101_v29 = vsel %vm1059_vm8, %v1100_v11, %v1096_v40 }
 0x1bb   :  { %v969_v35 = vpop.xlane.xlu0 %968  ;;  %v996_v38 = vpop.xlane.xlu1 %995 }
 0x1bc   :  { %v1058_v39 = vrot.slane %v969_v35, %v1057_v20  ;;  %v1105_v49 = vrot.slane %v996_v38, %v1064_v21 }
 0x1be   :  { %v1060_v22 = vsel %vm1059_vm8, %v1058_v39, %v1053_v51  ;;  %v1106_v46 = vsel %vm1066_vm9, %v1105_v49, %v1101_v29 }
 0x1bf   :  { %v972_v57 = vpop.xlane.xlu0 %971 }
 0x1c0   :  { %v1065_v52 = vrot.slane %v972_v57, %v1064_v21 }
 0x1c2   :  { %v1067_v47 = vsel %vm1066_vm9, %v1065_v52, %v1060_v22 }
 0x1c3   :  { %v1108_v23 = vsel %vm1107_vm10, %v1106_v46, %v1067_v47 }
 0x1c4   :  { %v1110_v24 = vmax.f32 %v947_v55, %v1108_v23 }
 0x1c6   :  { %1112 = vst.msk [vmem:[#allocation2] sm:$0x3] %vm37_vm1, %v1110_v24 }
 0x1cd   :  { %v1116_v58 = vld [vmem:[#allocation2] sm:$0x3] }
 0x1ce   :  { %1310 = vmatmul.mubr.msk.f32.vlgmr.msra.gmra.mrb[0].mxu0 %vm948_vm0, %v1116_v58 }
 0x2a1   :  { %v1201_v60 = vpop.f32.mrb[0].mxu0 }
 0x2a2   :  { %v1202_v5 = vadd.f32 %v1282_v59, %v1201_v60  ;;  %v1311_v6 = vpop.f32.mrb[1].mxu0 }
 0x2a4   :  { %v1205_v1 = vmax.f32 %v1202_v5, 0.0 }
 0x2a6   :  { %1206 = vst [vmem:[#allocation3] sm:$0x3] %v1205_v1 }
 0x2a7   :  { %1343 = shalt.err (!%p1340_p4)
}
 0x2a8   :  { %s1344_s17 = scalar_lea.hbm %s1969_s9, 32 }
 0x2a9   :  { %p1345_p5 = scmp.ne.s32.totalorder %s1969_s9, %s1344_s17  ;;  %p1348_p6 = scmp.lt.u32.totalorder %s1344_s17, %s1969_s9 }
 0x2ab   :  { %p1350_p7 = pnand %p1348_p6, %p1345_p5 }
 0x2ad   :  { %1353 = shalt.err (!%p1350_p7)
}
 0x2ae   :  { %1216 = dma.vmem_to_hbm [thread:$0]  %s1214_s14, 32, %s1969_s9, [#allocation4]  }
 0x2af   :  { %1354 = dma.done.wait [#allocation4], 32  }
 0x2b0   :  { %1355 = vsyncadd [#allocation4], 4294967264 }
 0x2b1   :  { %1220 = vsyncpa [#allocation4], 1 }

</bundles_post_ra>
